<compile_context>
chip_gen: v5e
topology: v5e:2x2
jax: 0.10.0
libtpu: 0.0.40
codegen_flags: <defaults>
</compile_context>

<pallas_src>
import functools
import itertools

import numpy as np
import jax
import jax.numpy as jnp
from jax.experimental import pallas as pl
from jax.experimental.pallas import tpu as pltpu

try:  # preferred host-side LAP solver
    from scipy.optimize import linear_sum_assignment as _scipy_lsa
except Exception:  # pragma: no cover - scipy not installed
    _scipy_lsa = None


def _round_up(x, m):
    return ((x + m - 1) // m) * m


def _tpu_generation_and_vmem():
    """Best-effort TPU generation + VMEM capacity (bytes)."""
    gen = 6
    try:
        kind = jax.devices()[0].device_kind.lower()
        digits = [int(ch) for ch in kind if ch.isdigit()]
        if digits:
            gen = digits[0]
    except Exception:
        pass
    vmem = None
    try:
        vmem = int(pltpu.get_tpu_info().vmem_capacity_bytes)
    except Exception:
        vmem = None
    if not vmem:
        vmem = (64 << 20) if gen >= 7 else (128 << 20)
    return gen, vmem


# ---------------------------------------------------------------------------
# Pallas kernel: one (TN, TM) tile of the matching cost matrix.
# ---------------------------------------------------------------------------
def _cost_kernel(logits_ref, onehot_t_ref, hb_out_ref, hb_tgt_t_ref,
                 vb_out_ref, vb_tgt_t_ref, c_ref, *,
                 w_class, w_hbbox, w_hgiou, w_vbbox, w_vgiou, compute_dtype):
    cdt = compute_dtype
    EPS = 1e-7  # guards union/enc == 0 for degenerate boxes

    # ---- class cost: -softmax(logits) @ onehot_t  (f32 softmax, bf16 MXU) --
    logits = logits_ref[...]                                   # (TN, Cp) f32
    m = jnp.max(logits, axis=-1, keepdims=True)
    e = jnp.exp(logits - m)
    denom = jnp.sum(e, axis=-1, keepdims=True)
    prob = e * pl.reciprocal(denom, approx=True)               # EUP reciprocal
    c = (-w_class) * jnp.dot(prob.astype(jnp.bfloat16), onehot_t_ref[...],
                             preferred_element_type=jnp.float32)  # (TN, TM)
    c = c.astype(cdt)

    def _recip(x):
        # EUP approx reciprocal; kept in f32 for portability across gens.
        if x.dtype == jnp.float32:
            return pl.reciprocal(x, approx=True)
        return pl.reciprocal(x.astype(jnp.float32), approx=True).astype(x.dtype)

    def add_plane(c, out_b, tgt_bt, w_l1, w_giou):
        # out_b : (TN, 4) cxcywh    tgt_bt : (4, TM) cxcywh (transposed)
        out_b = out_b.astype(cdt)     # cheap (TN,4) cast
        tgt_bt = tgt_bt.astype(cdt)   # cheap (4,TM) cast

        # --- L1 cdist, consumed immediately into the running cost ----------
        l1 = jnp.abs(out_b[:, 0:1] - tgt_bt[0:1, :])
        for k in range(1, 4):
            l1 = l1 + jnp.abs(out_b[:, k:k + 1] - tgt_bt[k:k + 1, :])
        c = c + w_l1 * l1

        # --- GIoU -----------------------------------------------------------
        # Per-side prep is O(TN) / O(TM); only broadcast terms are O(TN*TM).
        cx_o, cy_o, w_o, h_o = (out_b[:, k:k + 1] for k in range(4))   # (TN,1)
        cx_t, cy_t, w_t, h_t = (tgt_bt[k:k + 1, :] for k in range(4))  # (1,TM)
        x0_o, y0_o = cx_o - 0.5 * w_o, cy_o - 0.5 * h_o
        x1_o, y1_o = cx_o + 0.5 * w_o, cy_o + 0.5 * h_o
        x0_t, y0_t = cx_t - 0.5 * w_t, cy_t - 0.5 * h_t
        x1_t, y1_t = cx_t + 0.5 * w_t, cy_t + 0.5 * h_t
        area_o = w_o * h_o     # (TN,1)
        area_t = w_t * h_t     # (1,TM)

        # Signed intersection extent d; enclosing extent derived from
        #   max(x1)-min(x0) = (w_o + w_t) - (min(x1)-max(x0)),
        # which is >= 0 whenever w,h >= 0 (so no clamp needed on ew/eh).
        dx = jnp.minimum(x1_o, x1_t) - jnp.maximum(x0_o, x0_t)
        dy = jnp.minimum(y1_o, y1_t) - jnp.maximum(y0_o, y0_t)
        iw = jnp.maximum(dx, 0.0)
        ih = jnp.maximum(dy, 0.0)
        ew = (w_o + w_t) - dx
        eh = (h_o + h_t) - dy

        inter = iw * ih
        union = (area_o + area_t) - inter
        iou = inter * _recip(union + EPS)
        enc = ew * eh
        giou = iou - (enc - union) * _recip(enc + EPS)
        # cost_giou = -giou; the negation is folded into the weight.
        return c - w_giou * giou

    c = add_plane(c, hb_out_ref[...], hb_tgt_t_ref[...], w_hbbox, w_hgiou)
    c = add_plane(c, vb_out_ref[...], vb_tgt_t_ref[...], w_vbbox, w_vgiou)
    # TODO(synk): on v7x a bf16 output would halve the (N,M) writeback + D2H.
    c_ref[...] = c.astype(c_ref.dtype)


# ---------------------------------------------------------------------------
# Wrapper: pad to lane-dense shapes, tile over (N, M), call the kernel.
# ---------------------------------------------------------------------------
@functools.partial(
    jax.jit,
    static_argnames=("w_class", "w_hbbox", "w_hgiou", "w_vbbox", "w_vgiou"))
def _pallas_cost_matrix(logits, tgt_ids, hboxes, tgt_hboxes,
                        vboxes, tgt_vboxes, *,
                        w_class, w_hbbox, w_hgiou, w_vbbox, w_vgiou):
    N, num_classes = logits.shape
    M = int(tgt_hboxes.shape[0])

    gen, vmem_cap = _tpu_generation_and_vmem()
    use_bf16 = gen >= 6                      # bf16 VPU only on v6e / v7x
    cdt = jnp.bfloat16 if use_bf16 else jnp.float32
    elt = 2 if use_bf16 else 4

    # Pad classes to a multiple of 128 (lane-dense softmax / MXU matmul).
    C_pad = _round_up(max(num_classes, 128), 128)

    # Tile M (targets) so per-step VMEM is bounded regardless of total M and
    # the constant-ish inputs (one-hot, target boxes) stay small per tile.
    M_pad = _round_up(max(M, 128), 128)
    tm = min(M_pad, 1024)
    M_pad = _round_up(M_pad, tm)
    m_tiles = M_pad // tm

    # Generation-aware N tile: ~12 live (tn, tm) temps in the compute dtype.
    temp_budget = int(vmem_cap * (0.3 if gen >= 7 else 0.4))
    tn_cap = max(8, min(1024, (temp_budget // (tm * elt * 12)) // 8 * 8))
    tn = min(tn_cap, _round_up(N, 8))
    if gen >= 7:
        # Guarantee >= 2 grid steps so both v7x TensorCores get work and
        # DMA/compute overlap exists even for small N.
        if m_tiles * (_round_up(N, tn) // tn) < 2:
            tn = min(tn, _round_up(max((N + 1) // 2, 8), 8))
    N_pad = _round_up(N, tn)
    n_tiles = N_pad // tn

    # Padded logits: large negative so padded classes vanish from softmax.
    logits_p = jnp.full((N_pad, C_pad), -1e30, jnp.float32)
    logits_p = logits_p.at[:N, :num_classes].set(logits.astype(jnp.float32))

    # One-hot targets (exact in bf16; padded columns are all-zero -> cost 0).
    onehot = jax.nn.one_hot(tgt_ids, C_pad, dtype=jnp.bfloat16)   # (M, Cp)
    onehot_t = jnp.zeros((C_pad, M_pad), jnp.bfloat16)
    onehot_t = onehot_t.at[:, :M].set(onehot.T)

    # Non-degenerate dummy boxes so padded rows/cols never divide by zero.
    dummy = jnp.array([0.5, 0.5, 1.0, 1.0], jnp.float32)

    def pad_pred(b):
        return jnp.broadcast_to(dummy, (N_pad, 4)).at[:N, :].set(
            b.astype(jnp.float32))

    def pad_tgt_t(b):
        return jnp.broadcast_to(dummy[:, None], (4, M_pad)).at[:, :M].set(
            b.astype(jnp.float32).T)

    hb, vb = pad_pred(hboxes), pad_pred(vboxes)
    hbt, vbt = pad_tgt_t(tgt_hboxes), pad_tgt_t(tgt_vboxes)

    # Steady-state VMEM estimate -> explicit limit with generation-aware cap.
    # TODO(synk): the M-tiled target-side inputs could be single-buffered
    # (pipeline_mode=pl.Buffered(1)) when m_tiles == 1; with tm <= 1024 the
    # double-buffer waste is already < ~0.5 MiB, so it is left at the default.
    est = (2 * (tn * C_pad * 4 + 2 * tn * 4 * 4)      # N-tiled inputs (x2 buf)
           + 2 * (C_pad * tm * 2 + 2 * 4 * tm * 4)    # M-tiled inputs (x2 buf)
           + 2 * tn * tm * 4                          # output (x2 buf)
           + 12 * tn * tm * elt)                      # live elementwise temps
    vmem_cap_limit = (44 << 20) if gen >= 7 else (96 << 20)
    vmem_limit = int(min(max(2 * est, 16 << 20), vmem_cap_limit))

    kern = functools.partial(
        _cost_kernel, w_class=w_class, w_hbbox=w_hbbox, w_hgiou=w_hgiou,
        w_vbbox=w_vbbox, w_vgiou=w_vgiou, compute_dtype=cdt)

    c_full = pl.pallas_call(
        kern,
        out_shape=jax.ShapeDtypeStruct((N_pad, M_pad), jnp.float32),
        grid=(n_tiles, m_tiles),
        in_specs=[
            pl.BlockSpec((tn, C_pad), lambda i, j: (i, 0)),   # logits
            pl.BlockSpec((C_pad, tm), lambda i, j: (0, j)),   # one-hot^T
            pl.BlockSpec((tn, 4), lambda i, j: (i, 0)),       # pred hboxes
            pl.BlockSpec((4, tm), lambda i, j: (0, j)),       # tgt hboxes^T
            pl.BlockSpec((tn, 4), lambda i, j: (i, 0)),       # pred vboxes
            pl.BlockSpec((4, tm), lambda i, j: (0, j)),       # tgt vboxes^T
        ],
        out_specs=pl.BlockSpec((tn, tm), lambda i, j: (i, j)),
        compiler_params=pltpu.CompilerParams(
            dimension_semantics=("parallel", "parallel"),
            vmem_limit_bytes=vmem_limit),
    )(logits_p, onehot_t, hb, hbt, vb, vbt)
    return c_full[:N, :M]


# ---------------------------------------------------------------------------
# Host-side Hungarian assignment (scipy if available, else exact O(n^3) SAP).
# ---------------------------------------------------------------------------
def _hungarian_rows_leq_cols(cost):
    """Exact Hungarian for cost with shape (n, m), n <= m.
    Returns the assigned column for every row."""
    n, m = cost.shape
    INF = float("inf")
    u = [0.0] * (n + 1)
    v = [0.0] * (m + 1)
    p = [0] * (m + 1)          # p[j]: row (1-based) assigned to column j
    way = [0] * (m + 1)
    for i in range(1, n + 1):
        p[0] = i
        j0 = 0
        minv = [INF] * (m + 1)
        used = [False] * (m + 1)
        while True:
            used[j0] = True
            i0 = p[j0]
            delta = INF
            j1 = 0
            for j in range(1, m + 1):
                if not used[j]:
                    cur = float(cost[i0 - 1][j - 1]) - u[i0] - v[j]
                    if cur < minv[j]:
                        minv[j] = cur
                        way[j] = j0
                    if minv[j] < delta:
                        delta = minv[j]
                        j1 = j
            for j in range(m + 1):
                if used[j]:
                    u[p[j]] += delta
                    v[j] -= delta
                else:
                    minv[j] -= delta
            j0 = j1
            if p[j0] == 0:
                break
        while True:
            j1 = way[j0]
            p[j0] = p[j1]
            j0 = j1
            if j0 == 0:
                break
    col_of_row = [0] * n
    for j in range(1, m + 1):
        if p[j] != 0:
            col_of_row[p[j] - 1] = j - 1
    return col_of_row


def _linear_sum_assignment(c):
    # TODO(synk): the Hungarian algorithm has no Pallas equivalent; it runs on
    # host (equivalent to scipy.optimize.linear_sum_assignment).
    c = np.asarray(c, dtype=np.float64)
    nr, nc = c.shape
    if nr == 0 or nc == 0:
        return np.zeros((0,), np.int64), np.zeros((0,), np.int64)
    if _scipy_lsa is not None:
        r, col = _scipy_lsa(c)
        return np.asarray(r, np.int64), np.asarray(col, np.int64)
    transposed = False
    if nr > nc:
        c = c.T
        transposed = True
    cols = np.asarray(_hungarian_rows_leq_cols(c), dtype=np.int64)
    rows = np.arange(c.shape[0], dtype=np.int64)
    if transposed:
        rows, cols = cols, rows
    order = np.argsort(rows, kind="stable")
    return rows[order], cols[order]


# ---------------------------------------------------------------------------
# Matcher "module"
# ---------------------------------------------------------------------------
class MultiPlaneHungarianMatcher:
    def __init__(self, cost_class=1.0, cost_bbox=(1.0, 1.0, 1.0, 1.0),
                 cost_giou=(1.0, 1.0, 1.0, 1.0)):
        self.weights = dict(
            w_class=float(cost_class),
            w_hbbox=float(cost_bbox[0]), w_hgiou=float(cost_giou[0]),
            w_vbbox=float(cost_bbox[1]), w_vgiou=float(cost_giou[1]),
        )
        # TODO(synk): planes 'i', 'r3d', 'ori' follow the same L1 + GIoU
        # structure; only the default planes=['h','v'] path is implemented.

    def __call__(self, outputs, targets, planes=('h', 'v')):
        assert set(planes) == {'h', 'v'}, "only planes=['h','v'] implemented"
        bs, nq, num_classes = outputs['pred_logits'].shape

        logits = jnp.asarray(outputs['pred_logits']).reshape(bs * nq, num_classes)
        out_hbbox = jnp.asarray(outputs['pred_hboxes']).reshape(bs * nq, 4)
        out_vbbox = jnp.asarray(outputs['pred_vboxes']).reshape(bs * nq, 4)

        tgt_hbbox = jnp.concatenate([jnp.asarray(t['hboxes']) for t in targets], 0)
        tgt_vbbox = jnp.concatenate([jnp.asarray(t['vboxes']) for t in targets], 0)
        tgt_ids = jnp.concatenate([jnp.asarray(t['labels']) for t in targets], 0)

        C = _pallas_cost_matrix(
            logits, tgt_ids, out_hbbox, tgt_hbbox, out_vbbox, tgt_vbbox,
            **self.weights)
        # TODO(synk): overlap the host-side assignment with the next device
        # step instead of blocking here (pipeline-level change).
        C = jax.block_until_ready(C)

        C_np = np.asarray(C).reshape(bs, nq, -1)
        sizes = [int(t['hboxes'].shape[0]) for t in targets]
        indices = []
        start = 0
        for i, sz in enumerate(sizes):
            block = C_np[i, :, start:start + sz]
            indices.append(_linear_sum_assignment(block))
            start += sz
        return indices, C


# ---------------------------------------------------------------------------
# Pure-numpy reference of the cost matrix (for verification)
# ---------------------------------------------------------------------------
def _ref_cost(logits, onehot_t, hb, tgt_hb, vb, tgt_vb, w):
    logits = np.asarray(logits, np.float64)
    prob = np.exp(logits - logits.max(-1, keepdims=True))
    prob /= prob.sum(-1, keepdims=True)
    cost_class = -(prob @ np.asarray(onehot_t, np.float64))

    def xyxy(b):
        cx, cy, ww, hh = b[:, 0], b[:, 1], b[:, 2], b[:, 3]
        return np.stack([cx - 0.5 * ww, cy - 0.5 * hh,
                         cx + 0.5 * ww, cy + 0.5 * hh], -1)

    def plane(o, t):
        o, t = np.asarray(o, np.float64), np.asarray(t, np.float64)
        l1 = np.abs(o[:, None, :] - t[None, :, :]).sum(-1)
        ox, tx = xyxy(o), xyxy(t)
        ao = (ox[:, 2] - ox[:, 0]) * (ox[:, 3] - ox[:, 1])
        at = (tx[:, 2] - tx[:, 0]) * (tx[:, 3] - tx[:, 1])
        lt = np.maximum(ox[:, None, :2], tx[None, :, :2])
        rb = np.minimum(ox[:, None, 2:], tx[None, :, 2:])
        wh = np.clip(rb - lt, 0, None)
        inter = wh[..., 0] * wh[..., 1]
        union = ao[:, None] + at[None, :] - inter
        iou = inter / union
        lt2 = np.minimum(ox[:, None, :2], tx[None, :, :2])
        rb2 = np.maximum(ox[:, None, 2:], tx[None, :, 2:])
        wh2 = np.clip(rb2 - lt2, 0, None)
        enc = wh2[..., 0] * wh2[..., 1]
        giou = iou - (enc - union) / enc
        return l1, -giou

    hl1, hng = plane(hb, tgt_hb)
    vl1, vng = plane(vb, tgt_vb)
    return (w['w_hbbox'] * hl1 + w['w_hgiou'] * hng +
            w['w_vbbox'] * vl1 + w['w_vgiou'] * vng +
            w['w_class'] * cost_class)


# ---------------------------------------------------------------------------
if __name__ == "__main__":
    key = jax.random.PRNGKey(0)
    bs, nq, num_classes = 2, 8, 5
    sizes = [3, 4]

    ks = jax.random.split(key, 10)
    outputs = {
        'pred_logits': jax.random.normal(ks[0], (bs, nq, num_classes), jnp.float32),
        'pred_hboxes': jax.nn.sigmoid(jax.random.normal(ks[1], (bs, nq, 4))),
        'pred_vboxes': jax.nn.sigmoid(jax.random.normal(ks[2], (bs, nq, 4))),
    }
    targets = []
    for i, sz in enumerate(sizes):
        targets.append({
            'hboxes': jax.nn.sigmoid(jax.random.normal(ks[3 + 2 * i], (sz, 4))),
            'vboxes': jax.nn.sigmoid(jax.random.normal(ks[4 + 2 * i], (sz, 4))),
            'labels': jax.random.randint(ks[7 + i], (sz,), 0, num_classes - 1),
        })

    matcher = MultiPlaneHungarianMatcher()
    indices, C = matcher(outputs, targets)
    C = jax.block_until_ready(C)

    # --- verify the Pallas cost matrix against a numpy reference -----------
    # Tolerance is generation-aware: on v6e/v7x the elementwise IoU/GIoU math
    # runs in bf16 (plus EUP approx reciprocals), so the bound is looser; on
    # v5e and older everything elementwise stays f32.
    gen, _ = _tpu_generation_and_vmem()
    rtol, atol = (5e-2, 8e-2) if gen >= 6 else (2e-2, 2e-2)

    logits = np.asarray(outputs['pred_logits']).reshape(bs * nq, num_classes)
    onehot_t = np.asarray(jax.nn.one_hot(
        jnp.concatenate([t['labels'] for t in targets]), num_classes)).T
    ref = _ref_cost(
        logits, onehot_t,
        np.asarray(outputs['pred_hboxes']).reshape(-1, 4),
        np.concatenate([np.asarray(t['hboxes']) for t in targets]),
        np.asarray(outputs['pred_vboxes']).reshape(-1, 4),
        np.concatenate([np.asarray(t['vboxes']) for t in targets]),
        matcher.weights)
    np.testing.assert_allclose(np.asarray(C), ref, rtol=rtol, atol=atol)

    # --- verify the Hungarian solver against exhaustive search -------------
    C_np = np.asarray(C).reshape(bs, nq, -1)
    start = 0
    for i, sz in enumerate(sizes):
        block = C_np[i, :, start:start + sz]
        r, c = indices[i]
        assert r.shape == (sz,) and c.shape == (sz,)
        got = float(block[np.asarray(r), np.asarray(c)].sum())
        best = min(sum(block[perm[j], j] for j in range(sz))
                   for perm in itertools.permutations(range(nq), sz))
        assert got <= best + 1e-6, (got, best)
        start += sz

    print("KERNEL_OK")
</pallas_src>

<mosaic_0001>
module attributes {stable_mosaic.version = 11 : i64} {
  func.func @_cost_kernel(%arg0: i32, %arg1: i32, %arg2: memref<16x128xf32, #tpu.memory_space<vmem>>, %arg3: memref<128x128xbf16, #tpu.memory_space<vmem>>, %arg4: memref<16x4xf32, #tpu.memory_space<vmem>>, %arg5: memref<4x128xf32, #tpu.memory_space<vmem>>, %arg6: memref<16x4xf32, #tpu.memory_space<vmem>>, %arg7: memref<4x128xf32, #tpu.memory_space<vmem>>, %arg8: memref<16x128xf32, #tpu.memory_space<vmem>>) attributes {dimension_semantics = [#tpu.dimension_semantics<parallel>, #tpu.dimension_semantics<parallel>], iteration_bounds = array<i64: 1, 1>, scalar_prefetch = 0 : i64, scratch_operands = 0 : i64, tpu.core_type = #tpu.core_type<tc>, window_params = [{transform_indices = @transform_0, window_bounds = array<i64: 16, 128>}, {transform_indices = @transform_1, window_bounds = array<i64: 128, 128>}, {transform_indices = @transform_2, window_bounds = array<i64: 16, 4>}, {transform_indices = @transform_3, window_bounds = array<i64: 4, 128>}, {transform_indices = @transform_4, window_bounds = array<i64: 16, 4>}, {transform_indices = @transform_5, window_bounds = array<i64: 4, 128>}, {transform_indices = @transform_6, window_bounds = array<i64: 16, 128>}]} {
    %c0 = arith.constant 0 : index
    %c0_0 = arith.constant 0 : index
    %0 = vector.load %arg2[%c0, %c0_0] : memref<16x128xf32, #tpu.memory_space<vmem>>, vector<16x128xf32>
    %cst = arith.constant dense<0xFF800000> : vector<16xf32>
    %1 = vector.multi_reduction <maximumf>, %0, %cst [1] : vector<16x128xf32> to vector<16xf32>
    %2 = vector.shape_cast %1 : vector<16xf32> to vector<16x1xf32>
    %3 = vector.broadcast %2 : vector<16x1xf32> to vector<16x128xf32>
    %4 = arith.subf %0, %3 : vector<16x128xf32>
    %5 = math.exp %4 : vector<16x128xf32>
    %cst_1 = arith.constant dense<0.000000e+00> : vector<16xf32>
    %6 = vector.multi_reduction <add>, %5, %cst_1 [1] : vector<16x128xf32> to vector<16xf32>
    %7 = vector.shape_cast %6 : vector<16xf32> to vector<16x1xf32>
    %8 = tpu.reciprocal %7 {approx = true} : vector<16x1xf32> -> vector<16x1xf32>
    %9 = vector.broadcast %8 : vector<16x1xf32> to vector<16x128xf32>
    %10 = arith.mulf %5, %9 : vector<16x128xf32>
    %11 = arith.truncf %10 : vector<16x128xf32> to vector<16x128xbf16>
    %c0_2 = arith.constant 0 : index
    %c0_3 = arith.constant 0 : index
    %12 = vector.load %arg3[%c0_2, %c0_3] : memref<128x128xbf16, #tpu.memory_space<vmem>>, vector<128x128xbf16>
    %cst_4 = arith.constant dense<0.000000e+00> : vector<16x128xf32>
    %13 = tpu.matmul %11, %12, %cst_4 {dimension_numbers = #tpu.dot_dimension_numbers<[1], [0], [0], [1], [0, 0, 1, 1], [], []>} : vector<16x128xbf16>, vector<128x128xbf16>, vector<16x128xf32> -> vector<16x128xf32>
    %cst_5 = arith.constant -1.000000e+00 : f32
    %14 = vector.broadcast %cst_5 : f32 to vector<16x128xf32>
    %15 = arith.mulf %14, %13 : vector<16x128xf32>
    %16 = arith.truncf %15 : vector<16x128xf32> to vector<16x128xbf16>
    %c0_6 = arith.constant 0 : index
    %c0_7 = arith.constant 0 : index
    %17 = vector.load %arg4[%c0_6, %c0_7] : memref<16x4xf32, #tpu.memory_space<vmem>>, vector<16x4xf32>
    %c0_8 = arith.constant 0 : index
    %c0_9 = arith.constant 0 : index
    %18 = vector.load %arg5[%c0_8, %c0_9] : memref<4x128xf32, #tpu.memory_space<vmem>>, vector<4x128xf32>
    %19 = arith.truncf %17 : vector<16x4xf32> to vector<16x4xbf16>
    %20 = arith.truncf %18 : vector<4x128xf32> to vector<4x128xbf16>
    %21 = vector.extract_strided_slice %19 {offsets = [0, 0], sizes = [16, 1], strides = [1, 1]} : vector<16x4xbf16> to vector<16x1xbf16>
    %22 = vector.extract_strided_slice %20 {offsets = [0, 0], sizes = [1, 128], strides = [1, 1]} : vector<4x128xbf16> to vector<1x128xbf16>
    %23 = vector.broadcast %21 : vector<16x1xbf16> to vector<16x128xbf16>
    %24 = vector.broadcast %22 : vector<1x128xbf16> to vector<16x128xbf16>
    %25 = arith.subf %23, %24 : vector<16x128xbf16>
    %26 = math.absf %25 : vector<16x128xbf16>
    %27 = vector.extract_strided_slice %19 {offsets = [0, 1], sizes = [16, 1], strides = [1, 1]} : vector<16x4xbf16> to vector<16x1xbf16>
    %28 = vector.extract_strided_slice %20 {offsets = [1, 0], sizes = [1, 128], strides = [1, 1]} : vector<4x128xbf16> to vector<1x128xbf16>
    %29 = vector.broadcast %27 : vector<16x1xbf16> to vector<16x128xbf16>
    %30 = vector.broadcast %28 : vector<1x128xbf16> to vector<16x128xbf16>
    %31 = arith.subf %29, %30 : vector<16x128xbf16>
    %32 = math.absf %31 : vector<16x128xbf16>
    %33 = arith.addf %26, %32 : vector<16x128xbf16>
    %34 = vector.extract_strided_slice %19 {offsets = [0, 2], sizes = [16, 1], strides = [1, 1]} : vector<16x4xbf16> to vector<16x1xbf16>
    %35 = vector.extract_strided_slice %20 {offsets = [2, 0], sizes = [1, 128], strides = [1, 1]} : vector<4x128xbf16> to vector<1x128xbf16>
    %36 = vector.broadcast %34 : vector<16x1xbf16> to vector<16x128xbf16>
    %37 = vector.broadcast %35 : vector<1x128xbf16> to vector<16x128xbf16>
    %38 = arith.subf %36, %37 : vector<16x128xbf16>
    %39 = math.absf %38 : vector<16x128xbf16>
    %40 = arith.addf %33, %39 : vector<16x128xbf16>
    %41 = vector.extract_strided_slice %19 {offsets = [0, 3], sizes = [16, 1], strides = [1, 1]} : vector<16x4xbf16> to vector<16x1xbf16>
    %42 = vector.extract_strided_slice %20 {offsets = [3, 0], sizes = [1, 128], strides = [1, 1]} : vector<4x128xbf16> to vector<1x128xbf16>
    %43 = vector.broadcast %41 : vector<16x1xbf16> to vector<16x128xbf16>
    %44 = vector.broadcast %42 : vector<1x128xbf16> to vector<16x128xbf16>
    %45 = arith.subf %43, %44 : vector<16x128xbf16>
    %46 = math.absf %45 : vector<16x128xbf16>
    %47 = arith.addf %40, %46 : vector<16x128xbf16>
    %cst_10 = arith.constant 1.000000e+00 : bf16
    %48 = vector.broadcast %cst_10 : bf16 to vector<16x128xbf16>
    %49 = arith.mulf %48, %47 : vector<16x128xbf16>
    %50 = arith.addf %16, %49 : vector<16x128xbf16>
    %51 = vector.extract_strided_slice %19 {offsets = [0, 0], sizes = [16, 1], strides = [1, 1]} : vector<16x4xbf16> to vector<16x1xbf16>
    %52 = vector.extract_strided_slice %19 {offsets = [0, 1], sizes = [16, 1], strides = [1, 1]} : vector<16x4xbf16> to vector<16x1xbf16>
    %53 = vector.extract_strided_slice %19 {offsets = [0, 2], sizes = [16, 1], strides = [1, 1]} : vector<16x4xbf16> to vector<16x1xbf16>
    %54 = vector.extract_strided_slice %19 {offsets = [0, 3], sizes = [16, 1], strides = [1, 1]} : vector<16x4xbf16> to vector<16x1xbf16>
    %55 = vector.extract_strided_slice %20 {offsets = [0, 0], sizes = [1, 128], strides = [1, 1]} : vector<4x128xbf16> to vector<1x128xbf16>
    %56 = vector.extract_strided_slice %20 {offsets = [1, 0], sizes = [1, 128], strides = [1, 1]} : vector<4x128xbf16> to vector<1x128xbf16>
    %57 = vector.extract_strided_slice %20 {offsets = [2, 0], sizes = [1, 128], strides = [1, 1]} : vector<4x128xbf16> to vector<1x128xbf16>
    %58 = vector.extract_strided_slice %20 {offsets = [3, 0], sizes = [1, 128], strides = [1, 1]} : vector<4x128xbf16> to vector<1x128xbf16>
    %cst_11 = arith.constant 5.000000e-01 : bf16
    %59 = vector.broadcast %cst_11 : bf16 to vector<16x1xbf16>
    %60 = arith.mulf %59, %53 : vector<16x1xbf16>
    %61 = arith.subf %51, %60 : vector<16x1xbf16>
    %cst_12 = arith.constant 5.000000e-01 : bf16
    %62 = vector.broadcast %cst_12 : bf16 to vector<16x1xbf16>
    %63 = arith.mulf %62, %54 : vector<16x1xbf16>
    %64 = arith.subf %52, %63 : vector<16x1xbf16>
    %cst_13 = arith.constant 5.000000e-01 : bf16
    %65 = vector.broadcast %cst_13 : bf16 to vector<16x1xbf16>
    %66 = arith.mulf %65, %53 : vector<16x1xbf16>
    %67 = arith.addf %51, %66 : vector<16x1xbf16>
    %cst_14 = arith.constant 5.000000e-01 : bf16
    %68 = vector.broadcast %cst_14 : bf16 to vector<16x1xbf16>
    %69 = arith.mulf %68, %54 : vector<16x1xbf16>
    %70 = arith.addf %52, %69 : vector<16x1xbf16>
    %cst_15 = arith.constant 5.000000e-01 : bf16
    %71 = vector.broadcast %cst_15 : bf16 to vector<1x128xbf16>
    %72 = arith.mulf %71, %57 : vector<1x128xbf16>
    %73 = arith.subf %55, %72 : vector<1x128xbf16>
    %cst_16 = arith.constant 5.000000e-01 : bf16
    %74 = vector.broadcast %cst_16 : bf16 to vector<1x128xbf16>
    %75 = arith.mulf %74, %58 : vector<1x128xbf16>
    %76 = arith.subf %56, %75 : vector<1x128xbf16>
    %cst_17 = arith.constant 5.000000e-01 : bf16
    %77 = vector.broadcast %cst_17 : bf16 to vector<1x128xbf16>
    %78 = arith.mulf %77, %57 : vector<1x128xbf16>
    %79 = arith.addf %55, %78 : vector<1x128xbf16>
    %cst_18 = arith.constant 5.000000e-01 : bf16
    %80 = vector.broadcast %cst_18 : bf16 to vector<1x128xbf16>
    %81 = arith.mulf %80, %58 : vector<1x128xbf16>
    %82 = arith.addf %56, %81 : vector<1x128xbf16>
    %83 = arith.mulf %53, %54 : vector<16x1xbf16>
    %84 = arith.mulf %57, %58 : vector<1x128xbf16>
    %85 = vector.broadcast %67 : vector<16x1xbf16> to vector<16x128xbf16>
    %86 = vector.broadcast %79 : vector<1x128xbf16> to vector<16x128xbf16>
    %87 = arith.minimumf %85, %86 : vector<16x128xbf16>
    %88 = vector.broadcast %61 : vector<16x1xbf16> to vector<16x128xbf16>
    %89 = vector.broadcast %73 : vector<1x128xbf16> to vector<16x128xbf16>
    %90 = arith.maximumf %88, %89 : vector<16x128xbf16>
    %91 = arith.subf %87, %90 : vector<16x128xbf16>
    %92 = vector.broadcast %70 : vector<16x1xbf16> to vector<16x128xbf16>
    %93 = vector.broadcast %82 : vector<1x128xbf16> to vector<16x128xbf16>
    %94 = arith.minimumf %92, %93 : vector<16x128xbf16>
    %95 = vector.broadcast %64 : vector<16x1xbf16> to vector<16x128xbf16>
    %96 = vector.broadcast %76 : vector<1x128xbf16> to vector<16x128xbf16>
    %97 = arith.maximumf %95, %96 : vector<16x128xbf16>
    %98 = arith.subf %94, %97 : vector<16x128xbf16>
    %cst_19 = arith.constant 0.000000e+00 : bf16
    %99 = vector.broadcast %cst_19 : bf16 to vector<16x128xbf16>
    %100 = arith.maximumf %91, %99 : vector<16x128xbf16>
    %cst_20 = arith.constant 0.000000e+00 : bf16
    %101 = vector.broadcast %cst_20 : bf16 to vector<16x128xbf16>
    %102 = arith.maximumf %98, %101 : vector<16x128xbf16>
    %103 = vector.broadcast %53 : vector<16x1xbf16> to vector<16x128xbf16>
    %104 = vector.broadcast %57 : vector<1x128xbf16> to vector<16x128xbf16>
    %105 = arith.addf %103, %104 : vector<16x128xbf16>
    %106 = arith.subf %105, %91 : vector<16x128xbf16>
    %107 = vector.broadcast %54 : vector<16x1xbf16> to vector<16x128xbf16>
    %108 = vector.broadcast %58 : vector<1x128xbf16> to vector<16x128xbf16>
    %109 = arith.addf %107, %108 : vector<16x128xbf16>
    %110 = arith.subf %109, %98 : vector<16x128xbf16>
    %111 = arith.mulf %100, %102 : vector<16x128xbf16>
    %112 = vector.broadcast %83 : vector<16x1xbf16> to vector<16x128xbf16>
    %113 = vector.broadcast %84 : vector<1x128xbf16> to vector<16x128xbf16>
    %114 = arith.addf %112, %113 : vector<16x128xbf16>
    %115 = arith.subf %114, %111 : vector<16x128xbf16>
    %cst_21 = arith.constant 1.001170e-07 : bf16
    %116 = vector.broadcast %cst_21 : bf16 to vector<16x128xbf16>
    %117 = arith.addf %115, %116 : vector<16x128xbf16>
    %118 = arith.extf %117 : vector<16x128xbf16> to vector<16x128xf32>
    %119 = tpu.reciprocal %118 {approx = true} : vector<16x128xf32> -> vector<16x128xf32>
    %120 = arith.truncf %119 : vector<16x128xf32> to vector<16x128xbf16>
    %121 = arith.mulf %111, %120 : vector<16x128xbf16>
    %122 = arith.mulf %106, %110 : vector<16x128xbf16>
    %123 = arith.subf %122, %115 : vector<16x128xbf16>
    %cst_22 = arith.constant 1.001170e-07 : bf16
    %124 = vector.broadcast %cst_22 : bf16 to vector<16x128xbf16>
    %125 = arith.addf %122, %124 : vector<16x128xbf16>
    %126 = arith.extf %125 : vector<16x128xbf16> to vector<16x128xf32>
    %127 = tpu.reciprocal %126 {approx = true} : vector<16x128xf32> -> vector<16x128xf32>
    %128 = arith.truncf %127 : vector<16x128xf32> to vector<16x128xbf16>
    %129 = arith.mulf %123, %128 : vector<16x128xbf16>
    %130 = arith.subf %121, %129 : vector<16x128xbf16>
    %cst_23 = arith.constant 1.000000e+00 : bf16
    %131 = vector.broadcast %cst_23 : bf16 to vector<16x128xbf16>
    %132 = arith.mulf %131, %130 : vector<16x128xbf16>
    %133 = arith.subf %50, %132 : vector<16x128xbf16>
    %c0_24 = arith.constant 0 : index
    %c0_25 = arith.constant 0 : index
    %134 = vector.load %arg6[%c0_24, %c0_25] : memref<16x4xf32, #tpu.memory_space<vmem>>, vector<16x4xf32>
    %c0_26 = arith.constant 0 : index
    %c0_27 = arith.constant 0 : index
    %135 = vector.load %arg7[%c0_26, %c0_27] : memref<4x128xf32, #tpu.memory_space<vmem>>, vector<4x128xf32>
    %136 = arith.truncf %134 : vector<16x4xf32> to vector<16x4xbf16>
    %137 = arith.truncf %135 : vector<4x128xf32> to vector<4x128xbf16>
    %138 = vector.extract_strided_slice %136 {offsets = [0, 0], sizes = [16, 1], strides = [1, 1]} : vector<16x4xbf16> to vector<16x1xbf16>
    %139 = vector.extract_strided_slice %137 {offsets = [0, 0], sizes = [1, 128], strides = [1, 1]} : vector<4x128xbf16> to vector<1x128xbf16>
    %140 = vector.broadcast %138 : vector<16x1xbf16> to vector<16x128xbf16>
    %141 = vector.broadcast %139 : vector<1x128xbf16> to vector<16x128xbf16>
    %142 = arith.subf %140, %141 : vector<16x128xbf16>
    %143 = math.absf %142 : vector<16x128xbf16>
    %144 = vector.extract_strided_slice %136 {offsets = [0, 1], sizes = [16, 1], strides = [1, 1]} : vector<16x4xbf16> to vector<16x1xbf16>
    %145 = vector.extract_strided_slice %137 {offsets = [1, 0], sizes = [1, 128], strides = [1, 1]} : vector<4x128xbf16> to vector<1x128xbf16>
    %146 = vector.broadcast %144 : vector<16x1xbf16> to vector<16x128xbf16>
    %147 = vector.broadcast %145 : vector<1x128xbf16> to vector<16x128xbf16>
    %148 = arith.subf %146, %147 : vector<16x128xbf16>
    %149 = math.absf %148 : vector<16x128xbf16>
    %150 = arith.addf %143, %149 : vector<16x128xbf16>
    %151 = vector.extract_strided_slice %136 {offsets = [0, 2], sizes = [16, 1], strides = [1, 1]} : vector<16x4xbf16> to vector<16x1xbf16>
    %152 = vector.extract_strided_slice %137 {offsets = [2, 0], sizes = [1, 128], strides = [1, 1]} : vector<4x128xbf16> to vector<1x128xbf16>
    %153 = vector.broadcast %151 : vector<16x1xbf16> to vector<16x128xbf16>
    %154 = vector.broadcast %152 : vector<1x128xbf16> to vector<16x128xbf16>
    %155 = arith.subf %153, %154 : vector<16x128xbf16>
    %156 = math.absf %155 : vector<16x128xbf16>
    %157 = arith.addf %150, %156 : vector<16x128xbf16>
    %158 = vector.extract_strided_slice %136 {offsets = [0, 3], sizes = [16, 1], strides = [1, 1]} : vector<16x4xbf16> to vector<16x1xbf16>
    %159 = vector.extract_strided_slice %137 {offsets = [3, 0], sizes = [1, 128], strides = [1, 1]} : vector<4x128xbf16> to vector<1x128xbf16>
    %160 = vector.broadcast %158 : vector<16x1xbf16> to vector<16x128xbf16>
    %161 = vector.broadcast %159 : vector<1x128xbf16> to vector<16x128xbf16>
    %162 = arith.subf %160, %161 : vector<16x128xbf16>
    %163 = math.absf %162 : vector<16x128xbf16>
    %164 = arith.addf %157, %163 : vector<16x128xbf16>
    %cst_28 = arith.constant 1.000000e+00 : bf16
    %165 = vector.broadcast %cst_28 : bf16 to vector<16x128xbf16>
    %166 = arith.mulf %165, %164 : vector<16x128xbf16>
    %167 = arith.addf %133, %166 : vector<16x128xbf16>
    %168 = vector.extract_strided_slice %136 {offsets = [0, 0], sizes = [16, 1], strides = [1, 1]} : vector<16x4xbf16> to vector<16x1xbf16>
    %169 = vector.extract_strided_slice %136 {offsets = [0, 1], sizes = [16, 1], strides = [1, 1]} : vector<16x4xbf16> to vector<16x1xbf16>
    %170 = vector.extract_strided_slice %136 {offsets = [0, 2], sizes = [16, 1], strides = [1, 1]} : vector<16x4xbf16> to vector<16x1xbf16>
    %171 = vector.extract_strided_slice %136 {offsets = [0, 3], sizes = [16, 1], strides = [1, 1]} : vector<16x4xbf16> to vector<16x1xbf16>
    %172 = vector.extract_strided_slice %137 {offsets = [0, 0], sizes = [1, 128], strides = [1, 1]} : vector<4x128xbf16> to vector<1x128xbf16>
    %173 = vector.extract_strided_slice %137 {offsets = [1, 0], sizes = [1, 128], strides = [1, 1]} : vector<4x128xbf16> to vector<1x128xbf16>
    %174 = vector.extract_strided_slice %137 {offsets = [2, 0], sizes = [1, 128], strides = [1, 1]} : vector<4x128xbf16> to vector<1x128xbf16>
    %175 = vector.extract_strided_slice %137 {offsets = [3, 0], sizes = [1, 128], strides = [1, 1]} : vector<4x128xbf16> to vector<1x128xbf16>
    %cst_29 = arith.constant 5.000000e-01 : bf16
    %176 = vector.broadcast %cst_29 : bf16 to vector<16x1xbf16>
    %177 = arith.mulf %176, %170 : vector<16x1xbf16>
    %178 = arith.subf %168, %177 : vector<16x1xbf16>
    %cst_30 = arith.constant 5.000000e-01 : bf16
    %179 = vector.broadcast %cst_30 : bf16 to vector<16x1xbf16>
    %180 = arith.mulf %179, %171 : vector<16x1xbf16>
    %181 = arith.subf %169, %180 : vector<16x1xbf16>
    %cst_31 = arith.constant 5.000000e-01 : bf16
    %182 = vector.broadcast %cst_31 : bf16 to vector<16x1xbf16>
    %183 = arith.mulf %182, %170 : vector<16x1xbf16>
    %184 = arith.addf %168, %183 : vector<16x1xbf16>
    %cst_32 = arith.constant 5.000000e-01 : bf16
    %185 = vector.broadcast %cst_32 : bf16 to vector<16x1xbf16>
    %186 = arith.mulf %185, %171 : vector<16x1xbf16>
    %187 = arith.addf %169, %186 : vector<16x1xbf16>
    %cst_33 = arith.constant 5.000000e-01 : bf16
    %188 = vector.broadcast %cst_33 : bf16 to vector<1x128xbf16>
    %189 = arith.mulf %188, %174 : vector<1x128xbf16>
    %190 = arith.subf %172, %189 : vector<1x128xbf16>
    %cst_34 = arith.constant 5.000000e-01 : bf16
    %191 = vector.broadcast %cst_34 : bf16 to vector<1x128xbf16>
    %192 = arith.mulf %191, %175 : vector<1x128xbf16>
    %193 = arith.subf %173, %192 : vector<1x128xbf16>
    %cst_35 = arith.constant 5.000000e-01 : bf16
    %194 = vector.broadcast %cst_35 : bf16 to vector<1x128xbf16>
    %195 = arith.mulf %194, %174 : vector<1x128xbf16>
    %196 = arith.addf %172, %195 : vector<1x128xbf16>
    %cst_36 = arith.constant 5.000000e-01 : bf16
    %197 = vector.broadcast %cst_36 : bf16 to vector<1x128xbf16>
    %198 = arith.mulf %197, %175 : vector<1x128xbf16>
    %199 = arith.addf %173, %198 : vector<1x128xbf16>
    %200 = arith.mulf %170, %171 : vector<16x1xbf16>
    %201 = arith.mulf %174, %175 : vector<1x128xbf16>
    %202 = vector.broadcast %184 : vector<16x1xbf16> to vector<16x128xbf16>
    %203 = vector.broadcast %196 : vector<1x128xbf16> to vector<16x128xbf16>
    %204 = arith.minimumf %202, %203 : vector<16x128xbf16>
    %205 = vector.broadcast %178 : vector<16x1xbf16> to vector<16x128xbf16>
    %206 = vector.broadcast %190 : vector<1x128xbf16> to vector<16x128xbf16>
    %207 = arith.maximumf %205, %206 : vector<16x128xbf16>
    %208 = arith.subf %204, %207 : vector<16x128xbf16>
    %209 = vector.broadcast %187 : vector<16x1xbf16> to vector<16x128xbf16>
    %210 = vector.broadcast %199 : vector<1x128xbf16> to vector<16x128xbf16>
    %211 = arith.minimumf %209, %210 : vector<16x128xbf16>
    %212 = vector.broadcast %181 : vector<16x1xbf16> to vector<16x128xbf16>
    %213 = vector.broadcast %193 : vector<1x128xbf16> to vector<16x128xbf16>
    %214 = arith.maximumf %212, %213 : vector<16x128xbf16>
    %215 = arith.subf %211, %214 : vector<16x128xbf16>
    %cst_37 = arith.constant 0.000000e+00 : bf16
    %216 = vector.broadcast %cst_37 : bf16 to vector<16x128xbf16>
    %217 = arith.maximumf %208, %216 : vector<16x128xbf16>
    %cst_38 = arith.constant 0.000000e+00 : bf16
    %218 = vector.broadcast %cst_38 : bf16 to vector<16x128xbf16>
    %219 = arith.maximumf %215, %218 : vector<16x128xbf16>
    %220 = vector.broadcast %170 : vector<16x1xbf16> to vector<16x128xbf16>
    %221 = vector.broadcast %174 : vector<1x128xbf16> to vector<16x128xbf16>
    %222 = arith.addf %220, %221 : vector<16x128xbf16>
    %223 = arith.subf %222, %208 : vector<16x128xbf16>
    %224 = vector.broadcast %171 : vector<16x1xbf16> to vector<16x128xbf16>
    %225 = vector.broadcast %175 : vector<1x128xbf16> to vector<16x128xbf16>
    %226 = arith.addf %224, %225 : vector<16x128xbf16>
    %227 = arith.subf %226, %215 : vector<16x128xbf16>
    %228 = arith.mulf %217, %219 : vector<16x128xbf16>
    %229 = vector.broadcast %200 : vector<16x1xbf16> to vector<16x128xbf16>
    %230 = vector.broadcast %201 : vector<1x128xbf16> to vector<16x128xbf16>
    %231 = arith.addf %229, %230 : vector<16x128xbf16>
    %232 = arith.subf %231, %228 : vector<16x128xbf16>
    %cst_39 = arith.constant 1.001170e-07 : bf16
    %233 = vector.broadcast %cst_39 : bf16 to vector<16x128xbf16>
    %234 = arith.addf %232, %233 : vector<16x128xbf16>
    %235 = arith.extf %234 : vector<16x128xbf16> to vector<16x128xf32>
    %236 = tpu.reciprocal %235 {approx = true} : vector<16x128xf32> -> vector<16x128xf32>
    %237 = arith.truncf %236 : vector<16x128xf32> to vector<16x128xbf16>
    %238 = arith.mulf %228, %237 : vector<16x128xbf16>
    %239 = arith.mulf %223, %227 : vector<16x128xbf16>
    %240 = arith.subf %239, %232 : vector<16x128xbf16>
    %cst_40 = arith.constant 1.001170e-07 : bf16
    %241 = vector.broadcast %cst_40 : bf16 to vector<16x128xbf16>
    %242 = arith.addf %239, %241 : vector<16x128xbf16>
    %243 = arith.extf %242 : vector<16x128xbf16> to vector<16x128xf32>
    %244 = tpu.reciprocal %243 {approx = true} : vector<16x128xf32> -> vector<16x128xf32>
    %245 = arith.truncf %244 : vector<16x128xf32> to vector<16x128xbf16>
    %246 = arith.mulf %240, %245 : vector<16x128xbf16>
    %247 = arith.subf %238, %246 : vector<16x128xbf16>
    %cst_41 = arith.constant 1.000000e+00 : bf16
    %248 = vector.broadcast %cst_41 : bf16 to vector<16x128xbf16>
    %249 = arith.mulf %248, %247 : vector<16x128xbf16>
    %250 = arith.subf %167, %249 : vector<16x128xbf16>
    %251 = arith.extf %250 : vector<16x128xbf16> to vector<16x128xf32>
    %c0_42 = arith.constant 0 : index
    %c0_43 = arith.constant 0 : index
    %252 = vector.load %arg8[%c0_42, %c0_43] : memref<16x128xf32, #tpu.memory_space<vmem>>, vector<16x128xf32>
    tpu.vector_store %arg8[%c0_42, %c0_43], %251 {strides = array<i32>} : memref<16x128xf32, #tpu.memory_space<vmem>>, vector<16x128xf32>,
    return
  }
  func.func @transform_0(%arg0: i32, %arg1: i32) -> (i32, i32) {
    %c0_i32 = arith.constant 0 : i32
    %c0_i32_0 = arith.constant 0 : i32
    return %arg0, %c0_i32 : i32, i32
  }
  func.func @transform_1(%arg0: i32, %arg1: i32) -> (i32, i32) {
    %c0_i32 = arith.constant 0 : i32
    %c0_i32_0 = arith.constant 0 : i32
    return %c0_i32, %arg1 : i32, i32
  }
  func.func @transform_2(%arg0: i32, %arg1: i32) -> (i32, i32) {
    %c0_i32 = arith.constant 0 : i32
    %c0_i32_0 = arith.constant 0 : i32
    return %arg0, %c0_i32 : i32, i32
  }
  func.func @transform_3(%arg0: i32, %arg1: i32) -> (i32, i32) {
    %c0_i32 = arith.constant 0 : i32
    %c0_i32_0 = arith.constant 0 : i32
    return %c0_i32, %arg1 : i32, i32
  }
  func.func @transform_4(%arg0: i32, %arg1: i32) -> (i32, i32) {
    %c0_i32 = arith.constant 0 : i32
    %c0_i32_0 = arith.constant 0 : i32
    return %arg0, %c0_i32 : i32, i32
  }
  func.func @transform_5(%arg0: i32, %arg1: i32) -> (i32, i32) {
    %c0_i32 = arith.constant 0 : i32
    %c0_i32_0 = arith.constant 0 : i32
    return %c0_i32, %arg1 : i32, i32
  }
  func.func @transform_6(%arg0: i32, %arg1: i32) -> (i32, i32) {
    %c0_i32 = arith.constant 0 : i32
    return %arg0, %arg1 : i32, i32
  }
}

</mosaic_0001>

<bundles_post_ra>
// kernel: _pallas_cost_matrix.1
= control target key start
LH: loop header
LB: loop body
LE: loop exit
PB: predicated region body
PF: predicated region fallthrough
CT: control target
= control target key end

     0   :  { %v1197_v1 = vmov 0   ;;  %v1198_v3 = vmov 1   ;;  %v1199_v8 = vmov 2   ;;  %v1200_v9 = vmov 3   ;;  %s1203_s14 = smov 126   ;;  %s1600_s0 = inlined_call_operand.vmem [shape: f32[16,128], index: 0, kind: input, shape index: {}]   ;;  %s1601_s2 = inlined_call_operand.vmem [shape: f32[16,4], index: 2, kind: input, shape index: {}]   ;;  %s1602_s3 = inlined_call_operand.vmem [shape: f32[4,128], index: 3, kind: input, shape index: {}]   ;;  %s1603_s4 = inlined_call_operand.vmem [shape: f32[16,4], index: 4, kind: input, shape index: {}]   ;;  %s1604_s1 = inlined_call_operand.vmem [shape: bf16[128,128], index: 1, kind: input, shape index: {}]   ;;  %s1605_s5 = inlined_call_operand.vmem [shape: f32[4,128], index: 5, kind: input, shape index: {}]   ;;  %s1606_s6 = inlined_call_operand.vmem [shape: f32[16,128], index: 6, kind: output, shape index: {}]  }
   0x1   :  { %v23_v0 = vld [vmem:[%s1600_s0] sm:$0xff]  ;;  %1127 = vset.pattern.permute.xlu2 %v1197_v1  ;;  %1129 = vset.pattern.permute.xlu1 %v1198_v3  ;;  %v127_v5 = vld [vmem:[%s1601_s2 + $0x8] sm:$0xff]  ;;  %v1202_v27 = vmov 839922192   ;;  %v1119_v38 = vld [vmem:[%s1604_s1 + $0x38] sm:$0xff] }
   0x2   :  { %v126_v2 = vld [vmem:[%s1601_s2] sm:$0xff]  ;;  %25 = vmax.xlane.f32.xlu0 %v23_v0  ;;  %v130_v6 = vpack.c.bf16 %v127_v5, %v127_v5  ;;  %v24_v7 = vld [vmem:[%s1600_s0 + $0x8] sm:$0xff]  ;;  %s1201_s0 = smov 127   ;;  %v138_v28 = vunpack.c.l.s4 %v1202_v27  ;;  %108 = vmatpush.bf16.msra.mxu0 %v1119_v38  ;;  %v1118_v42 = vld [vmem:[%s1604_s1 + $0x30] sm:$0xff] }
   0x3   :  { %v129_v4 = vpack.c.bf16 %v126_v2, %v126_v2  ;;  %1128 = vset.pattern.permute.xlu0 %v1198_v3  ;;  %v128_v22 = vld [vmem:[%s1602_s3] sm:$0xf]  ;;  %v600_v26 = vld [vmem:[%s1603_s4 + $0x8] sm:$0xff] }
   0x4   :  { %172 = vperm.xlu1 %1129, %v130_v6   ;;  %v1263_v18 = vunpack.c.l.bf16 %v130_v6  ;;  %v1277_v24 = vpack.c.bf16 %v128_v22, %v128_v22  ;;  %v599_v25 = vld [vmem:[%s1603_s4] sm:$0xff]  ;;  %v1290_v33 = vpack.c.bf16 %v600_v26, %v600_v26  ;;  %v1294_v35 = vunpack.c.0.s8 %v138_v28  ;;  %v1117_v50 = vld [vmem:[%s1604_s1 + $0x28] sm:$0xff] }
   0x5   :  { %134 = vperm.xlu2 %1127, %v129_v4   ;;  %v1261_v17 = vunpack.c.l.bf16 %v129_v4  ;;  %v1288_v32 = vpack.c.bf16 %v599_v25, %v599_v25 }
   0x6   :  { %v179_v29 = vshrl.u32 %v1277_v24, 16  ;;  %v279_v31 = vmul.f32 0.5, %v1263_v18  ;;  %v151_v36 = vpack.i.b16 %v1277_v24, %v1277_v24  ;;  %v1305_v40 = vunpack.c.l.bf16 %v1290_v33  ;;  %109 = vmatpush.bf16.msra.mxu0 %v1118_v42 }
   0x7   :  { %v1137_v20 = vpack.i.bf16 %v1263_v18, %v1261_v17  ;;  %v278_v30 = vmul.f32 0.5, %v1261_v17  ;;  %v1302_v39 = vunpack.c.l.bf16 %v1288_v32 }
   0x8   :  { %v180_v37 = vpack.i.b16 %v179_v29, %v179_v29  ;;  %v153_v43 = vperm.slane %v151_v36, 0  ;;  %v752_v48 = vmul.f32 0.5, %v1305_v40  ;;  %v216_v59 = vperm.slane %v151_v36, 1 }
   0x9   :  { %v751_v47 = vmul.f32 0.5, %v1302_v39  ;;  %v1132_v55 = vpack.i.bf16 %v279_v31, %v278_v30 }
   0xa   :  { %27 = vmax.xlane.f32.xlu0 %v24_v7  ;;  %v182_v45 = vperm.slane %v180_v37, 0  ;;  %v156_v51 = vunpack.c.l.bf16 %v153_v43  ;;  %110 = vmatpush.bf16.msra.mxu0 %v1117_v50  ;;  %v1318_v2 = vunpack.c.l.bf16 %v216_v59 }
   0xb   :  { %v1142_v63 = vpack.i.bf16 %v752_v48, %v751_v47 }
   0xc   :  { %1152 = vset.pattern.permute.xlu1 %v1199_v8  ;;  %v185_v53 = vunpack.c.l.bf16 %v182_v45 }
   0xd   :  { %143 = vperm.xlu2 %1127, %v130_v6  }
  0x15   :  { %1130 = vset.pattern.permute.xlu2 %v1199_v8 }
  0x16   :  { %201 = vperm.xlu2 %1130, %v129_v4  }
  0x1e   :  { %209 = vperm.xlu2 %1130, %v130_v6   ;;  %164 = vperm.xlu0 %1128, %v129_v4  }
  0x26   :  { %1131 = vset.pattern.permute.xlu2 %v1200_v9  ;;  %1153 = vset.pattern.permute.xlu0 %v1199_v8 }
  0x27   :  { %235 = vperm.xlu2 %1131, %v129_v4  }
  0x2f   :  { %243 = vperm.xlu2 %1131, %v130_v6  }
  0x37   :  { %1156 = vset.pattern.permute.xlu2 %v1197_v1 }
  0x38   :  { %1138 = vrot.lane.b32.xlu2 %v1137_v20, %s1201_s0 }
  0x5f   :  { %v1266_v19 = vpop.permute.xlu2 %134 }
  0x67   :  { %v144_v23 = vpop.permute.xlu2 %143 }
  0x68   :  { %v149_v44 = vperm.slane %v144_v23, %v1294_v35  ;;  %v1147_v23 = vpack.i.bf16 %v1305_v40, %v1302_v39 }
  0x6a   :  { %v155_v52 = vunpack.c.l.bf16 %v149_v44 }
  0x6c   :  { %v158_v56 = vsub.f32 %v155_v52, %v156_v51 }
  0x6e   :  { %v160_v60 = vpack.c.bf16 %v158_v56, %v158_v56 }
  0x70   :  { %v1292_v34 = vpop.permute.xlu2 %201  ;;  %v162_v4 = vand.u32 2147450879, %v160_v60 }
  0x75   :  { %v26_v10 = vpop.xlane.xlu0 %25 }
  0x76   :  { %v29_v11 = vsub.f32 %v23_v0, %v26_v10  ;;  %v173_v41 = vpop.permute.xlu1 %172 }
  0x77   :  { %v178_v46 = vperm.slane %v173_v41, %v1294_v35  ;;  %v207_v41 = vperm.slane %v1292_v34, %v1294_v35 }
  0x78   :  { %v31_v12 = vmul.f32 1.442695, %v29_v11  ;;  %v210_v49 = vpop.permute.xlu2 %209  ;;  %v250_v11 = vperm.slane %v180_v37, 1 }
  0x79   :  { %v184_v54 = vunpack.c.l.bf16 %v178_v46  ;;  %v215_v61 = vperm.slane %v210_v49, %v1294_v35  ;;  %v1339_v47 = vunpack.c.l.bf16 %v207_v41 }
  0x7a   :  { %1173 = vpow2.f32 %v31_v12  ;;  %v1330_v25 = vunpack.c.l.bf16 %v250_v11 }
  0x7b   :  { %v187_v57 = vsub.f32 %v184_v54, %v185_v53  ;;  %v1320_v5 = vunpack.c.l.bf16 %v215_v61 }
  0x7d   :  { %v28_v13 = vpop.xlane.xlu0 %27  ;;  %v189_v62 = vpack.c.bf16 %v187_v57, %v187_v57 }
  0x7e   :  { %v30_v14 = vsub.f32 %v24_v7, %v28_v13  ;;  %v140_v7 = vperm.slane %v1266_v19, %v1294_v35 }
  0x7f   :  { %v191_v6 = vand.u32 2147450879, %v189_v62 }
  0x80   :  { %v1259_v15 = vpop.eup %1173  ;;  %v33_v16 = vmul.f32 1.442695, %v30_v14  ;;  %v193_v14 = vunpack.c.l.bf16 %v162_v4  ;;  %v154_v22 = vunpack.c.l.bf16 %v140_v7 }
  0x81   :  { %35 = vadd.xlane.f32.xlu1 %v1259_v15  ;;  %v236_v58 = vpop.permute.xlu2 %235  ;;  %v195_v20 = vunpack.c.l.bf16 %v191_v6 }
  0x82   :  { %1175 = vpow2.f32 %v33_v16  ;;  %v221_v16 = vsub.f32 %v1320_v5, %v1318_v2  ;;  %v157_v29 = vsub.f32 %v154_v22, %v156_v51  ;;  %v241_v50 = vperm.slane %v236_v58, %v1294_v35  ;;  %v1114_v22 = vld [vmem:[%s1604_s1 + $0x10] sm:$0xff] }
  0x83   :  { %v197_v28 = vadd.f32 %v195_v20, %v193_v14 }
  0x84   :  { %v223_v27 = vpack.c.bf16 %v221_v16, %v221_v16  ;;  %v159_v38 = vpack.c.bf16 %v157_v29, %v157_v29  ;;  %v1344_v34 = vunpack.c.l.bf16 %v241_v50  ;;  %v1115_v16 = vld [vmem:[%s1604_s1 + $0x18] sm:$0xff] }
  0x85   :  { %v199_v37 = vpack.c.bf16 %v197_v28, %v197_v28 }
  0x86   :  { %v225_v36 = vand.u32 2147450879, %v223_v27  ;;  %v161_v46 = vand.u32 2147450879, %v159_v38  ;;  %v254_v62 = vsub.f32 %v1344_v34, %v1330_v25 }
  0x87   :  { %v227_v45 = vunpack.c.l.bf16 %v199_v37 }
  0x88   :  { %v1271_v21 = vpop.eup %1175  ;;  %v229_v44 = vunpack.c.l.bf16 %v225_v36  ;;  %v192_v52 = vunpack.c.l.bf16 %v161_v46 }
  0x89   :  { %37 = vadd.xlane.f32.xlu1 %v1271_v21  ;;  %v244_v10 = vpop.permute.xlu2 %243 }
  0x8a   :  { %v249_v12 = vperm.slane %v244_v10, %v1294_v35  ;;  %v231_v51 = vadd.f32 %v229_v44, %v227_v45 }
  0x8c   :  { %v1332_v26 = vunpack.c.l.bf16 %v249_v12  ;;  %v233_v56 = vpack.c.bf16 %v231_v51, %v231_v51 }
  0x8e   :  { %v255_v30 = vsub.f32 %v1332_v26, %v1330_v25  ;;  %v261_v57 = vunpack.c.l.bf16 %v233_v56 }
  0x90   :  { %v165_v0 = vpop.permute.xlu0 %164  ;;  %v257_v42 = vpack.c.bf16 %v255_v30, %v255_v30 }
  0x91   :  { %v170_v13 = vperm.slane %v165_v0, %v1294_v35  ;;  %v256_v0 = vpack.c.bf16 %v254_v62, %v254_v62 }
  0x92   :  { %v259_v48 = vand.u32 2147450879, %v257_v42  ;;  %v1139_v27 = vpop.permute.xlu2 %1138 }
  0x93   :  { %v183_v19 = vunpack.c.l.bf16 %v170_v13  ;;  %v258_v7 = vand.u32 2147450879, %v256_v0  ;;  %v1116_v13 = vld [vmem:[%s1604_s1 + $0x20] sm:$0xff]  ;;  %v1141_v28 = vunpack.i.h.bf16 %v1139_v27  ;;  %v1140_v29 = vunpack.i.l.bf16 %v1139_v27 }
  0x94   :  { %v263_v54 = vunpack.c.l.bf16 %v259_v48  ;;  %111 = vmatpush.bf16.msra.mxu0 %v1116_v13  ;;  %v300_v13 = vunpack.c.l.bf16 %v1277_v24 }
  0x95   :  { %v186_v31 = vsub.f32 %v183_v19, %v185_v53  ;;  %v220_v53 = vsub.f32 %v1339_v47, %v1318_v2  ;;  %v262_v11 = vunpack.c.l.bf16 %v258_v7  ;;  %v1112_v19 = vld [vmem:[%s1604_s1] sm:$0xff]  ;;  %v320_v30 = vmul.f32 %v1141_v28, %v1263_v18 }
  0x96   :  { %v1346_v61 = vadd.f32 %v263_v54, %v261_v57 }
  0x97   :  { %v188_v43 = vpack.c.bf16 %v186_v31, %v186_v31  ;;  %v222_v59 = vpack.c.bf16 %v220_v53, %v220_v53  ;;  %v319_v31 = vmul.f32 %v1140_v29, %v1261_v17  ;;  %v322_v36 = vpack.c.bf16 %v320_v30, %v320_v30 }
  0x98   :  { %112 = vmatpush.bf16.msra.mxu0 %v1115_v16  ;;  %v301_v16 = vmul.f32 0.5, %v300_v13  ;;  %v324_v30 = vrot.slane %v300_v13, 1 }
  0x99   :  { %v190_v49 = vand.u32 2147450879, %v188_v43  ;;  %v321_v37 = vpack.c.bf16 %v319_v31, %v319_v31  ;;  %507 = vperm.xlu0 %1153, %v322_v36  }
  0x9c   :  { %113 = vmatpush.bf16.msra.mxu0 %v1114_v22 }
  0xa1   :  { %1155 = vset.pattern.permute.xlu0 %v1197_v1 }
  0xa2   :  { %1133 = vrot.lane.b32.xlu1 %v1132_v55, %s1203_s14  ;;  %v194_v55 = vunpack.c.l.bf16 %v190_v49 }
  0xa4   :  { %v196_v60 = vadd.f32 %v194_v55, %v192_v52 }
  0xa6   :  { %v198_v58 = vpack.c.bf16 %v196_v60, %v196_v60 }
  0xa8   :  { %v226_v6 = vunpack.c.l.bf16 %v198_v58 }
  0xaa   :  { %1143 = vrot.lane.b32.xlu1 %v1142_v63, %s1203_s14  ;;  %v224_v63 = vand.u32 2147450879, %v222_v59 }
  0xac   :  { %v228_v4 = vunpack.c.l.bf16 %v224_v63 }
  0xae   :  { %v230_v10 = vadd.f32 %v228_v4, %v226_v6 }
  0xb0   :  { %v232_v12 = vpack.c.bf16 %v230_v10, %v230_v10 }
  0xb2   :  { %1148 = vrot.lane.b32.xlu1 %v1147_v23, %s1201_s0  ;;  %v260_v14 = vunpack.c.l.bf16 %v232_v12  ;;  %v1113_v23 = vld [vmem:[%s1604_s1 + $0x8] sm:$0xff] }
  0xb3   :  { %114 = vmatpush.bf16.msra.mxu0 %v1113_v23 }
  0xb4   :  { %v1356_v20 = vadd.f32 %v262_v11, %v260_v14 }
  0xb7   :  { %115 = vmatpush.bf16.msra.mxu0 %v1112_v19 }
  0xba   :  { %498 = vperm.xlu1 %1152, %v321_v37  }
  0xc2   :  { %1154 = vset.pattern.permute.xlu1 %v1197_v1 }
  0xf4   :  { %v36_v38 = vpop.xlane.xlu1 %35 }
  0xf5   :  { %1177 = vrcp.f32 %v36_v38 }
  0xfb   :  { %v1178_v42 = vpop.eup %1177 }
  0xfc   :  { %v38_v41 = vpop.xlane.xlu1 %37  ;;  %v41_v44 = vmul.f32 %v1178_v42, %v1259_v15 }
  0xfd   :  { %1179 = vrcp.f32 %v38_v41 }
 0x103   :  { %v1180_v43 = vpop.eup %1179 }
 0x104   :  { %v42_v45 = vmul.f32 %v1180_v43, %v1271_v21 }
 0x106   :  { %v43_v46 = vpack.c.bf16 %v42_v45, %v41_v44 }
 0x108   :  { %116 = vmatmul.bf16.vlgmr.msra.gmra.mxu0 %v43_v46 }
 0x114   :  { %v1134_v48 = vpop.permute.xlu1 %1133 }
 0x115   :  { %v1136_v49 = vunpack.i.h.bf16 %v1134_v48  ;;  %v1135_v50 = vunpack.i.l.bf16 %v1134_v48 }
 0x117   :  { %v297_v51 = vadd.f32 %v1136_v49, %v1263_v18  ;;  %v292_v52 = vsub.f32 %v1261_v17, %v1135_v50  ;;  %v296_v53 = vadd.f32 %v1135_v50, %v1261_v17  ;;  %v293_v21 = vsub.f32 %v1263_v18, %v1136_v49 }
 0x119   :  { %v299_v54 = vpack.c.bf16 %v297_v51, %v297_v51  ;;  %v298_v55 = vpack.c.bf16 %v296_v53, %v296_v53  ;;  %v294_v56 = vpack.c.bf16 %v292_v52, %v292_v52  ;;  %v295_v60 = vpack.c.bf16 %v293_v21, %v293_v21 }
 0x11a   :  { %v468_v51 = vadd.f32 %v1318_v2, %v1339_v47 }
 0x11b   :  { %339 = vperm.xlu0 %1155, %v299_v54   ;;  %330 = vperm.xlu1 %1154, %v298_v55  }
 0x11c   :  { %359 = vperm.xlu2 %1156, %v294_v56   ;;  %v1144_v15 = vpop.permute.xlu1 %1143  ;;  %v470_v47 = vpack.c.bf16 %v468_v51, %v468_v51 }
 0x11d   :  { %v1146_v57 = vunpack.i.h.bf16 %v1144_v15  ;;  %v1145_v59 = vunpack.i.l.bf16 %v1144_v15  ;;  %v478_v15 = vadd.f32 %v1330_v25, %v1344_v34 }
 0x11f   :  { %v770_v62 = vadd.f32 %v1146_v57, %v1305_v40  ;;  %v769_v17 = vadd.f32 %v1145_v59, %v1302_v39  ;;  %v766_v18 = vsub.f32 %v1305_v40, %v1146_v57  ;;  %v765_v4 = vsub.f32 %v1302_v39, %v1145_v59 }
 0x121   :  { %v772_v63 = vpack.c.bf16 %v770_v62, %v770_v62  ;;  %v771_v58 = vpack.c.bf16 %v769_v17, %v769_v17  ;;  %v768_v0 = vpack.c.bf16 %v766_v18, %v766_v18  ;;  %v767_v6 = vpack.c.bf16 %v765_v4, %v765_v4 }
 0x122   :  { %v479_v4 = vadd.f32 %v1330_v25, %v1332_v26 }
 0x123   :  { %1158 = vset.pattern.permute.xlu0 %v1198_v3  ;;  %368 = vperm.xlu1 %1154, %v295_v60  }
 0x124   :  { %1157 = vset.pattern.permute.xlu2 %v1198_v3  ;;  %403 = vperm.xlu0 %1158, %v299_v54   ;;  %v1149_v7 = vpop.permute.xlu1 %1148 }
 0x125   :  { %395 = vperm.xlu2 %1157, %v298_v55   ;;  %v1151_v10 = vunpack.i.h.bf16 %v1149_v7  ;;  %v1150_v14 = vunpack.i.l.bf16 %v1149_v7  ;;  %v508_v55 = vpop.permute.xlu0 %507 }
 0x127   :  { %v793_v11 = vmul.f32 %v1151_v10, %v1305_v40  ;;  %v792_v22 = vmul.f32 %v1150_v14, %v1302_v39  ;;  %v302_v40 = vpack.c.bf16 %v301_v16, %v301_v16  ;;  %v1439_v14 = vunpack.c.l.bf16 %v470_v47 }
 0x129   :  { %v795_v12 = vpack.c.bf16 %v793_v11, %v793_v11  ;;  %v794_v23 = vpack.c.bf16 %v792_v22, %v792_v22  ;;  %v303_v19 = vunpack.c.l.bf16 %v302_v40 }
 0x12b   :  { %812 = vperm.xlu1 %1154, %v772_v63   ;;  %v305_v27 = vrot.slane %v303_v19, 2 }
 0x12c   :  { %868 = vperm.xlu0 %1158, %v771_v58   ;;  %v499_v53 = vpop.permute.xlu1 %498 }
 0x12d   :  { %422 = vperm.xlu2 %1157, %v294_v56   ;;  %v309_v24 = vadd.f32 %v305_v27, %v300_v13  ;;  %v307_v29 = vsub.f32 %v300_v13, %v305_v27  ;;  %v504_v17 = vperm.slane %v499_v53, %v1294_v35 }
 0x12f   :  { %v308_v37 = vpack.c.bf16 %v307_v29, %v307_v29  ;;  %v518_v22 = vunpack.c.l.bf16 %v504_v17 }
 0x131   :  { %v437_v41 = vshrl.u32 %v308_v37, 16  ;;  %v376_v50 = vpack.i.b16 %v308_v37, %v308_v37 }
 0x133   :  { %841 = vperm.xlu1 %1154, %v768_v0   ;;  %v438_v48 = vpack.i.b16 %v437_v41, %v437_v41  ;;  %v1426_v57 = vperm.slane %v376_v50, 0  ;;  %v267_v41 = vpack.c.bf16 %v1346_v61, %v1346_v61  ;;  %v266_v61 = vpack.c.bf16 %v1356_v20, %v1356_v20 }
 0x134   :  { %1163 = vset.pattern.permute.xlu0 %v1199_v8 }
 0x135   :  { %430 = vperm.xlu2 %1157, %v295_v60   ;;  %682 = vperm.xlu0 %1163, %v1290_v33   ;;  %v440_v56 = vperm.slane %v438_v48, 0  ;;  %v381_v7 = vunpack.c.l.bf16 %v1426_v57 }
 0x137   :  { %v1432_v18 = vunpack.c.l.bf16 %v440_v56 }
 0x13b   :  { %1161 = vset.pattern.permute.xlu1 %v1198_v3 }
 0x13c   :  { %895 = vperm.xlu1 %1161, %v767_v6  }
 0x13d   :  { %1159 = vset.pattern.permute.xlu2 %v1197_v1  ;;  %1168 = vset.pattern.permute.xlu0 %v1197_v1 }
 0x13e   :  { %803 = vperm.xlu2 %1159, %v771_v58   ;;  %607 = vperm.xlu0 %1168, %v1288_v32  }
 0x144   :  { %1162 = vset.pattern.permute.xlu1 %v1199_v8 }
 0x145   :  { %674 = vperm.xlu1 %1162, %v1288_v32  }
 0x146   :  { %832 = vperm.xlu2 %1159, %v767_v6   ;;  %1172 = vset.pattern.permute.xlu0 %v1199_v8 }
 0x14d   :  { %1165 = vset.pattern.permute.xlu1 %v1200_v9 }
 0x14e   :  { %1160 = vset.pattern.permute.xlu2 %v1198_v3  ;;  %716 = vperm.xlu1 %1165, %v1290_v33  }
 0x14f   :  { %876 = vperm.xlu2 %1160, %v772_v63  }
 0x156   :  { %1167 = vset.pattern.permute.xlu1 %v1199_v8 }
 0x157   :  { %903 = vperm.xlu2 %1160, %v768_v0   ;;  %980 = vperm.xlu1 %1167, %v795_v12   ;;  %v480_v0 = vpack.c.bf16 %v478_v15, %v478_v15 }
 0x159   :  { %v482_v26 = vunpack.c.l.bf16 %v480_v0 }
 0x15f   :  { %1164 = vset.pattern.permute.xlu2 %v1200_v9  ;;  %1170 = vset.pattern.permute.xlu1 %v1198_v3  ;;  %v601_v9 = vld [vmem:[%s1605_s5] sm:$0xf] }
 0x160   :  { %708 = vperm.xlu2 %1164, %v1288_v32   ;;  %637 = vperm.xlu1 %1170, %v1288_v32   ;;  %v1408_v28 = vpack.c.bf16 %v601_v9, %v601_v9  ;;  %v310_v32 = vpack.c.bf16 %v309_v24, %v309_v24  ;;  %v481_v9 = vpack.c.bf16 %v479_v4, %v479_v4 }
 0x162   :  { %v1412_v39 = vunpack.c.l.bf16 %v1408_v28  ;;  %v410_v31 = vshrl.u32 %v310_v32, 16  ;;  %v347_v60 = vpack.i.b16 %v310_v32, %v310_v32  ;;  %v1454_v53 = vunpack.c.l.bf16 %v481_v9 }
 0x164   :  { %v774_v36 = vmul.f32 0.5, %v1412_v39  ;;  %v411_v38 = vpack.i.b16 %v410_v31, %v410_v31 }
 0x166   :  { %v775_v42 = vpack.c.bf16 %v774_v36, %v774_v36  ;;  %v413_v45 = vperm.slane %v411_v38, 0 }
 0x168   :  { %1166 = vset.pattern.permute.xlu2 %v1199_v8  ;;  %v776_v49 = vunpack.c.l.bf16 %v775_v42 }
 0x169   :  { %971 = vperm.xlu2 %1166, %v794_v23  }
 0x16a   :  { %v778_v21 = vrot.slane %v776_v49, 2 }
 0x16c   :  { %v782_v6 = vadd.f32 %v778_v21, %v1412_v39  ;;  %v780_v25 = vsub.f32 %v1412_v39, %v778_v21 }
 0x16e   :  { %v783_v29 = vpack.c.bf16 %v782_v6, %v782_v6  ;;  %v1451_v48 = vpack.c.bf16 %v780_v25, %v780_v25 }
 0x170   :  { %v820_v51 = vpack.i.b16 %v783_v29, %v783_v29 }
 0x171   :  { %1169 = vset.pattern.permute.xlu2 %v1197_v1  ;;  %v326_v1 = vmul.f32 %v324_v30, %v300_v13  ;;  %v349_v13 = vperm.slane %v347_v60, 0 }
 0x172   :  { %616 = vperm.xlu2 %1169, %v1290_v33  }
 0x173   :  { %v327_v44 = vpack.c.bf16 %v326_v1, %v326_v1  ;;  %v352_v31 = vunpack.c.l.bf16 %v349_v13 }
 0x175   :  { %v515_v52 = vpack.i.b16 %v327_v44, %v327_v44 }
 0x176   :  { %v360_v8 = vpop.permute.xlu2 %359 }
 0x177   :  { %v365_v59 = vperm.slane %v360_v8, %v1294_v35  ;;  %v517_v62 = vperm.slane %v515_v52, 1  ;;  %v883_v52 = vshrl.u32 %v783_v29, 16 }
 0x179   :  { %v379_v10 = vunpack.c.l.bf16 %v365_v59  ;;  %v520_v16 = vunpack.c.l.bf16 %v517_v62  ;;  %v849_v62 = vpack.i.b16 %v1451_v48, %v1451_v48 }
 0x17a   :  { %1171 = vset.pattern.permute.xlu2 %v1198_v3  ;;  %v469_v3 = vadd.f32 %v1318_v2, %v1320_v5  ;;  %v513_v2 = vperm.slane %v508_v55, %v1294_v35 }
 0x17b   :  { %645 = vperm.xlu2 %1171, %v1290_v33   ;;  %v1422_v33 = vunpack.c.l.bf16 %v413_v45  ;;  %v382_v8 = vmax.f32 %v379_v10, %v381_v7  ;;  %v521_v1 = vadd.f32 %v520_v16, %v518_v22  ;;  %v270_v10 = vunpack.c.l.bf16 %v266_v61 }
 0x17c   :  { %v471_v63 = vpack.c.bf16 %v469_v3, %v469_v3  ;;  %v519_v40 = vunpack.c.l.bf16 %v513_v2  ;;  %v1460_v2 = vunpack.c.l.bf16 %v267_v41 }
 0x17d   :  { %v384_v3 = vpack.c.bf16 %v382_v8, %v382_v8  ;;  %v523_v56 = vpack.c.bf16 %v521_v1, %v521_v1 }
 0x17e   :  { %v1441_v23 = vunpack.c.l.bf16 %v471_v63  ;;  %v522_v38 = vadd.f32 %v520_v16, %v519_v40  ;;  %v1462_v63 = vperm.slane %v820_v51, 0 }
 0x17f   :  { %v396_v43 = vpop.permute.xlu2 %395  ;;  %v1467_v16 = vunpack.c.l.bf16 %v523_v56 }
 0x180   :  { %v401_v46 = vperm.slane %v396_v43, %v1294_v35  ;;  %v524_v59 = vpack.c.bf16 %v522_v38, %v522_v38 }
 0x182   :  { %v414_v54 = vunpack.c.l.bf16 %v401_v46  ;;  %v1469_v22 = vunpack.c.l.bf16 %v524_v59 }
 0x184   :  { %v417_v58 = vmin.f32 %v414_v54, %v1422_v33 }
 0x185   :  { %v117_v11 = vpop.f32.mrf.mxu0 }
 0x186   :  { %v419_v19 = vpack.c.bf16 %v417_v58, %v417_v58  ;;  %v122_v24 = vmul.f32 -1.0, %v117_v11  ;;  %v884_v58 = vpack.i.b16 %v883_v52, %v883_v52 }
 0x187   :  { %v423_v5 = vpop.permute.xlu2 %422 }
 0x188   :  { %v428_v34 = vperm.slane %v423_v5, %v1294_v35  ;;  %v448_v44 = vunpack.c.l.bf16 %v419_v19  ;;  %v124_v49 = vpack.c.bf16 %v122_v24, %v122_v24  ;;  %v886_v29 = vperm.slane %v884_v58, 0 }
 0x18a   :  { %v441_v12 = vunpack.c.l.bf16 %v428_v34  ;;  %v268_v17 = vunpack.c.l.bf16 %v124_v49  ;;  %v388_v34 = vunpack.c.l.bf16 %v384_v3 }
 0x18c   :  { %v444_v27 = vmax.f32 %v441_v12, %v1432_v18  ;;  %v272_v25 = vadd.f32 %v270_v10, %v268_v17  ;;  %v910_v17 = vshrl.u32 %v1451_v48, 16 }
 0x18d   :  { %v331_v32 = vpop.permute.xlu1 %330  ;;  %v340_v37 = vpop.permute.xlu0 %339 }
 0x18e   :  { %v446_v30 = vpack.c.bf16 %v444_v27, %v444_v27  ;;  %v336_v36 = vperm.slane %v331_v32, %v1294_v35  ;;  %v345_v42 = vperm.slane %v340_v37, %v1294_v35  ;;  %v1471_v27 = vperm.slane %v849_v62, 0  ;;  %v119_v9 = vpop.f32.mrf.mxu0 }
 0x18f   :  { %v431_v43 = vpop.permute.xlu2 %430  ;;  %v123_v41 = vmul.f32 -1.0, %v119_v9  ;;  %v1493_v9 = vpack.i.b16 %v1408_v28, %v1408_v28 }
 0x190   :  { %v450_v45 = vunpack.c.l.bf16 %v446_v30  ;;  %v350_v46 = vunpack.c.l.bf16 %v336_v36  ;;  %v436_v50 = vperm.slane %v431_v43, %v1294_v35  ;;  %v351_v15 = vunpack.c.l.bf16 %v345_v42 }
 0x191   :  { %v125_v61 = vpack.c.bf16 %v123_v41, %v123_v41 }
 0x192   :  { %v452_v54 = vsub.f32 %v448_v44, %v450_v45  ;;  %v353_v55 = vmin.f32 %v350_v46, %v352_v31  ;;  %v442_v21 = vunpack.c.l.bf16 %v436_v50  ;;  %v354_v11 = vmin.f32 %v351_v15, %v352_v31 }
 0x193   :  { %v854_v44 = vunpack.c.l.bf16 %v1471_v27  ;;  %v274_v45 = vpack.c.bf16 %v272_v25, %v272_v25  ;;  %v1479_v50 = vunpack.c.l.bf16 %v886_v29 }
 0x194   :  { %v454_v60 = vpack.c.bf16 %v452_v54, %v452_v54  ;;  %v355_v47 = vpack.c.bf16 %v353_v55, %v353_v55  ;;  %v445_v12 = vmax.f32 %v442_v21, %v1432_v18  ;;  %v825_v18 = vunpack.c.l.bf16 %v1462_v63 }
 0x195   :  { %v369_v5 = vpop.permute.xlu1 %368  ;;  %v356_v36 = vpack.c.bf16 %v354_v11, %v354_v11 }
 0x196   :  { %v462_v0 = vunpack.c.l.bf16 %v454_v60  ;;  %v386_v4 = vunpack.c.l.bf16 %v355_v47  ;;  %v374_v20 = vperm.slane %v369_v5, %v1294_v35  ;;  %v404_v6 = vpop.permute.xlu0 %403  ;;  %v447_v37 = vpack.c.bf16 %v445_v12, %v445_v12 }
 0x197   :  { %v409_v13 = vperm.slane %v404_v6, %v1294_v35 }
 0x198   :  { %v390_v40 = vsub.f32 %v386_v4, %v388_v34  ;;  %v804_v19 = vpop.permute.xlu2 %803  ;;  %v380_v24 = vunpack.c.l.bf16 %v374_v20  ;;  %v464_v8 = vmax.f32 %v462_v0, 0.0  ;;  %v484_v30 = vsub.f32 %v482_v26, %v462_v0 }
 0x199   :  { %v415_v32 = vunpack.c.l.bf16 %v409_v13  ;;  %v809_v43 = vperm.slane %v804_v19, %v1294_v35  ;;  %v451_v54 = vunpack.c.l.bf16 %v447_v37 }
 0x19a   :  { %v392_v31 = vpack.c.bf16 %v390_v40, %v390_v40  ;;  %v383_v1 = vmax.f32 %v380_v24, %v381_v7  ;;  %v466_v51 = vpack.c.bf16 %v464_v8, %v464_v8  ;;  %v486_v52 = vpack.c.bf16 %v484_v30, %v484_v30 }
 0x19b   :  { %v418_v38 = vmin.f32 %v415_v32, %v1422_v33  ;;  %v387_v7 = vunpack.c.l.bf16 %v356_v36  ;;  %v823_v21 = vunpack.c.l.bf16 %v809_v43  ;;  %v1489_v40 = vunpack.c.l.bf16 %v125_v61 }
 0x19c   :  { %v456_v42 = vunpack.c.l.bf16 %v392_v31  ;;  %v385_v46 = vpack.c.bf16 %v383_v1, %v383_v1  ;;  %v490_v5 = vunpack.c.l.bf16 %v466_v51  ;;  %v553_v58 = vunpack.c.l.bf16 %v486_v52 }
 0x19d   :  { %v420_v49 = vpack.c.bf16 %v418_v38, %v418_v38  ;;  %v813_v26 = vpop.permute.xlu1 %812  ;;  %v826_v12 = vmin.f32 %v823_v21, %v825_v18  ;;  %v911_v8 = vpack.i.b16 %v910_v17, %v910_v17 }
 0x19e   :  { %v458_v3 = vmax.f32 %v456_v42, 0.0  ;;  %v474_v57 = vsub.f32 %v1439_v14, %v456_v42  ;;  %v389_v33 = vunpack.c.l.bf16 %v385_v46  ;;  %v1484_v14 = vunpack.c.l.bf16 %v274_v45 }
 0x19f   :  { %v449_v55 = vunpack.c.l.bf16 %v420_v49  ;;  %v818_v13 = vperm.slane %v813_v26, %v1294_v35  ;;  %v828_v41 = vpack.c.bf16 %v826_v12, %v826_v12  ;;  %v869_v26 = vpop.permute.xlu0 %868 }
 0x1a0   :  { %v460_v56 = vpack.c.bf16 %v458_v3, %v458_v3  ;;  %v476_v15 = vpack.c.bf16 %v474_v57, %v474_v57  ;;  %v833_v59 = vpop.permute.xlu2 %832  ;;  %v391_v60 = vsub.f32 %v387_v7, %v389_v33 }
 0x1a1   :  { %v453_v47 = vsub.f32 %v449_v55, %v451_v54  ;;  %v838_v62 = vperm.slane %v833_v59, %v1294_v35  ;;  %v824_v42 = vunpack.c.l.bf16 %v818_v13 }
 0x1a2   :  { %v488_v34 = vunpack.c.l.bf16 %v460_v56  ;;  %v551_v0 = vunpack.c.l.bf16 %v476_v15  ;;  %v393_v4 = vpack.c.bf16 %v391_v60, %v391_v60  ;;  %v874_v56 = vperm.slane %v869_v26, %v1294_v35 }
 0x1a3   :  { %v455_v20 = vpack.c.bf16 %v453_v47, %v453_v47  ;;  %v852_v6 = vunpack.c.l.bf16 %v838_v62  ;;  %v827_v60 = vmin.f32 %v824_v42, %v825_v18 }
 0x1a4   :  { %v492_v10 = vmul.f32 %v490_v5, %v488_v34  ;;  %v555_v11 = vmul.f32 %v553_v58, %v551_v0  ;;  %v457_v19 = vunpack.c.l.bf16 %v393_v4  ;;  %v689_v4 = vperm.slane %v1493_v9, 1 }
 0x1a5   :  { %v463_v48 = vunpack.c.l.bf16 %v455_v20  ;;  %v842_v25 = vpop.permute.xlu1 %841  ;;  %v855_v29 = vmax.f32 %v852_v6, %v854_v44  ;;  %v913_v20 = vperm.slane %v911_v8, 0  ;;  %v829_v27 = vpack.c.bf16 %v827_v60, %v827_v60 }
 0x1a6   :  { %v494_v24 = vpack.c.bf16 %v492_v10, %v492_v10  ;;  %v557_v32 = vpack.c.bf16 %v555_v11, %v555_v11  ;;  %v459_v30 = vmax.f32 %v457_v19, 0.0  ;;  %v475_v31 = vsub.f32 %v1441_v23, %v457_v19 }
 0x1a7   :  { %v465_v36 = vmax.f32 %v463_v48, 0.0  ;;  %v485_v37 = vsub.f32 %v1454_v53, %v463_v48  ;;  %v857_v3 = vpack.c.bf16 %v855_v29, %v855_v29  ;;  %v847_v23 = vperm.slane %v842_v25, %v1294_v35  ;;  %v683_v13 = vpop.permute.xlu0 %682 }
 0x1a8   :  { %v1499_v1 = vunpack.c.l.bf16 %v494_v24  ;;  %v559_v38 = vunpack.c.l.bf16 %v557_v32  ;;  %v461_v43 = vpack.c.bf16 %v459_v30, %v459_v30  ;;  %v477_v45 = vpack.c.bf16 %v475_v31, %v475_v31 }
 0x1a9   :  { %v467_v46 = vpack.c.bf16 %v465_v36, %v465_v36  ;;  %v487_v49 = vpack.c.bf16 %v485_v37, %v485_v37  ;;  %v877_v33 = vpop.permute.xlu2 %876  ;;  %v853_v15 = vunpack.c.l.bf16 %v847_v23  ;;  %v861_v17 = vunpack.c.l.bf16 %v857_v3 }
 0x1aa   :  { %v529_v51 = vsub.f32 %v1467_v16, %v1499_v1  ;;  %v565_v52 = vadd.f32 1.0011718e-07, %v559_v38  ;;  %v489_v57 = vunpack.c.l.bf16 %v461_v43  ;;  %v552_v7 = vunpack.c.l.bf16 %v477_v45 }
 0x1ab   :  { %v491_v53 = vunpack.c.l.bf16 %v467_v46  ;;  %v554_v54 = vunpack.c.l.bf16 %v487_v49  ;;  %v652_v16 = vshrl.u32 %v1408_v28, 16  ;;  %v856_v5 = vmax.f32 %v853_v15, %v854_v44 }
 0x1ac   :  { %v531_v55 = vpack.c.bf16 %v529_v51, %v529_v51  ;;  %v567_v61 = vpack.c.bf16 %v565_v52, %v565_v52  ;;  %v859_v10 = vunpack.c.l.bf16 %v828_v41  ;;  %v887_v11 = vunpack.c.l.bf16 %v874_v56 }
 0x1ad   :  { %v493_v21 = vmul.f32 %v491_v53, %v489_v57  ;;  %v556_v59 = vmul.f32 %v554_v54, %v552_v7  ;;  %v858_v28 = vpack.c.bf16 %v856_v5, %v856_v5  ;;  %v882_v12 = vperm.slane %v877_v33, %v1294_v35 }
 0x1ae   :  { %v533_v47 = vunpack.c.l.bf16 %v531_v55  ;;  %v569_v62 = vunpack.c.l.bf16 %v567_v61  ;;  %v896_v58 = vpop.permute.xlu1 %895  ;;  %v863_v44 = vsub.f32 %v859_v10, %v861_v17  ;;  %v1514_v48 = vpack.i.b16 %v652_v16, %v652_v16 }
 0x1af   :  { %v495_v34 = vpack.c.bf16 %v493_v21, %v493_v21  ;;  %v558_v0 = vpack.c.bf16 %v556_v59, %v556_v59  ;;  %v1518_v29 = vunpack.c.l.bf16 %v689_v4  ;;  %v862_v30 = vunpack.c.l.bf16 %v858_v28 }
 0x1b0   :  { %v535_v6 = vadd.f32 1.0011718e-07, %v533_v47  ;;  %1181 = vrcp.f32 %v569_v62  ;;  %v561_v25 = vsub.f32 %v559_v38, %v533_v47  ;;  %v688_v31 = vperm.slane %v683_v13, %v1294_v35 }
 0x1b1   :  { %v1511_v63 = vunpack.c.l.bf16 %v495_v34  ;;  %v560_v18 = vunpack.c.l.bf16 %v558_v0  ;;  %v916_v36 = vunpack.c.l.bf16 %v913_v20  ;;  %v890_v42 = vmin.f32 %v887_v11, %v1479_v50  ;;  %v904_v45 = vpop.permute.xlu2 %903 }
 0x1b2   :  { %v537_v19 = vpack.c.bf16 %v535_v6, %v535_v6  ;;  %v888_v43 = vunpack.c.l.bf16 %v882_v12  ;;  %v860_v38 = vunpack.c.l.bf16 %v829_v27  ;;  %v865_v49 = vpack.c.bf16 %v863_v44, %v863_v44 }
 0x1b3   :  { %v530_v24 = vsub.f32 %v1469_v22, %v1511_v63  ;;  %v566_v32 = vadd.f32 1.0011718e-07, %v560_v18  ;;  %v723_v22 = vperm.slane %v1514_v48, 1  ;;  %v563_v26 = vpack.c.bf16 %v561_v25, %v561_v25 }
 0x1b4   :  { %v539_v8 = vunpack.c.l.bf16 %v537_v19  ;;  %v864_v57 = vsub.f32 %v860_v38, %v862_v30  ;;  %v1523_v7 = vunpack.c.l.bf16 %v688_v31  ;;  %v901_v53 = vperm.slane %v896_v58, %v1294_v35 }
 0x1b5   :  { %v532_v37 = vpack.c.bf16 %v530_v24, %v530_v24  ;;  %v568_v41 = vpack.c.bf16 %v566_v32, %v566_v32  ;;  %v909_v54 = vperm.slane %v904_v45, %v1294_v35  ;;  %v892_v55 = vpack.c.bf16 %v890_v42, %v890_v42 }
 0x1b6   :  { %v1182_v46 = vpop.eup %1181  ;;  %1183 = vrcp.f32 %v539_v8  ;;  %v891_v61 = vmin.f32 %v888_v43, %v1479_v50  ;;  %v1528_v15 = vunpack.c.l.bf16 %v865_v49  ;;  %v914_v21 = vunpack.c.l.bf16 %v901_v53 }
 0x1b7   :  { %v573_v51 = vpack.c.bf16 %v1182_v46, %v1182_v46  ;;  %v534_v52 = vunpack.c.l.bf16 %v532_v37  ;;  %v570_v3 = vunpack.c.l.bf16 %v568_v41  ;;  %v675_v23 = vpop.permute.xlu1 %674  ;;  %v915_v59 = vunpack.c.l.bf16 %v909_v54 }
 0x1b8   :  { %v575_v60 = vunpack.c.l.bf16 %v563_v26  ;;  %v680_v62 = vperm.slane %v675_v23, %v1294_v35  ;;  %v866_v5 = vpack.c.bf16 %v864_v57, %v864_v57  ;;  %v942_v58 = vadd.f32 %v1518_v29, %v1523_v7 }
 0x1b9   :  { %v536_v33 = vadd.f32 1.0011718e-07, %v534_v52  ;;  %1185 = vrcp.f32 %v570_v3  ;;  %v577_v56 = vunpack.c.l.bf16 %v573_v51  ;;  %v562_v47 = vsub.f32 %v560_v18, %v534_v52 }
 0x1ba   :  { %v917_v34 = vmax.f32 %v914_v21, %v916_v36  ;;  %v918_v0 = vmax.f32 %v915_v59, %v916_v36  ;;  %v921_v50 = vunpack.c.l.bf16 %v892_v55  ;;  %v893_v6 = vpack.c.bf16 %v891_v61, %v891_v61  ;;  %v709_v44 = vpop.permute.xlu2 %708 }
 0x1bb   :  { %v538_v16 = vpack.c.bf16 %v536_v33, %v536_v33  ;;  %v579_v10 = vmul.f32 %v577_v56, %v575_v60  ;;  %v931_v11 = vmax.f32 %v1528_v15, 0.0  ;;  %v564_v19 = vpack.c.bf16 %v562_v47, %v562_v47 }
 0x1bc   :  { %v1184_v17 = vpop.eup %1183  ;;  %v919_v28 = vpack.c.bf16 %v917_v34, %v917_v34  ;;  %v920_v12 = vpack.c.bf16 %v918_v0, %v918_v0  ;;  %v1534_v27 = vunpack.c.l.bf16 %v680_v62  ;;  %v930_v24 = vunpack.c.l.bf16 %v866_v5 }
 0x1bd   :  { %v543_v4 = vpack.c.bf16 %v1184_v17, %v1184_v17  ;;  %v540_v20 = vunpack.c.l.bf16 %v538_v16  ;;  %v944_v32 = vpack.c.bf16 %v942_v58, %v942_v58  ;;  %v922_v36 = vunpack.c.l.bf16 %v893_v6 }
 0x1be   :  { %v923_v8 = vunpack.c.l.bf16 %v919_v28  ;;  %v924_v37 = vunpack.c.l.bf16 %v920_v12  ;;  %v941_v41 = vadd.f32 %v1518_v29, %v1534_v27  ;;  %v581_v42 = vpack.c.bf16 %v579_v10, %v579_v10 }
 0x1bf   :  { %v1186_v13 = vpop.eup %1185  ;;  %v545_v18 = vunpack.c.l.bf16 %v543_v4  ;;  %1187 = vrcp.f32 %v540_v20  ;;  %v714_v46 = vperm.slane %v709_v44, %v1294_v35  ;;  %v576_v49 = vunpack.c.l.bf16 %v564_v19 }
 0x1c0   :  { %v574_v25 = vpack.c.bf16 %v1186_v13, %v1186_v13  ;;  %v717_v30 = vpop.permute.xlu1 %716  ;;  %v925_v45 = vsub.f32 %v921_v50, %v923_v8  ;;  %v926_v26 = vsub.f32 %v922_v36, %v924_v37  ;;  %v943_v51 = vpack.c.bf16 %v941_v41, %v941_v41 }
 0x1c1   :  { %v547_v31 = vmul.f32 %v545_v18, %v1499_v1  ;;  %v932_v52 = vmax.f32 %v930_v24, 0.0  ;;  %v946_v3 = vunpack.c.l.bf16 %v944_v32  ;;  %v1540_v57 = vunpack.c.l.bf16 %v723_v22 }
 0x1c2   :  { %v578_v43 = vunpack.c.l.bf16 %v574_v25  ;;  %v927_v23 = vpack.c.bf16 %v925_v45, %v925_v45  ;;  %v928_v33 = vpack.c.bf16 %v926_v26, %v926_v26  ;;  %v1542_v55 = vunpack.c.l.bf16 %v714_v46 }
 0x1c3   :  { %v549_v38 = vpack.c.bf16 %v547_v31, %v547_v31  ;;  %v945_v21 = vunpack.c.l.bf16 %v943_v51  ;;  %v722_v59 = vperm.slane %v717_v30, %v1294_v35  ;;  %v273_v60 = vadd.f32 %v1460_v2, %v1489_v40  ;;  %v972_v50 = vpop.permute.xlu2 %971 }
 0x1c4   :  { %v580_v54 = vmul.f32 %v578_v43, %v576_v49  ;;  %v935_v56 = vunpack.c.l.bf16 %v927_v23  ;;  %v585_v16 = vunpack.c.l.bf16 %v581_v42  ;;  %v933_v47 = vpack.c.bf16 %v931_v11, %v931_v11 }
 0x1c5   :  { %v1188_v1 = vpop.eup %1187  ;;  %v583_v53 = vunpack.c.l.bf16 %v549_v38  ;;  %v936_v62 = vunpack.c.l.bf16 %v928_v33  ;;  %v934_v22 = vpack.c.bf16 %v932_v52, %v932_v52  ;;  %v948_v5 = vsub.f32 %v946_v3, %v930_v24 }
 0x1c6   :  { %v544_v61 = vpack.c.bf16 %v1188_v1, %v1188_v1  ;;  %v937_v58 = vmax.f32 %v935_v56, 0.0  ;;  %v582_v0 = vpack.c.bf16 %v580_v54, %v580_v54  ;;  %v951_v20 = vadd.f32 %v1540_v57, %v1542_v55 }
 0x1c7   :  { %v587_v34 = vsub.f32 %v583_v53, %v585_v16  ;;  %v938_v4 = vmax.f32 %v936_v62, 0.0  ;;  %v947_v2 = vsub.f32 %v945_v21, %v1528_v15  ;;  %v1551_v40 = vunpack.c.l.bf16 %v722_v59 }
 0x1c8   :  { %v546_v17 = vunpack.c.l.bf16 %v544_v61  ;;  %v939_v28 = vpack.c.bf16 %v937_v58, %v937_v58  ;;  %v275_v11 = vpack.c.bf16 %v273_v60, %v273_v60  ;;  %v961_v12 = vunpack.c.l.bf16 %v933_v47 }
 0x1c9   :  { %v981_v6 = vpop.permute.xlu1 %980  ;;  %v940_v13 = vpack.c.bf16 %v938_v4, %v938_v4  ;;  %v953_v18 = vpack.c.bf16 %v951_v20, %v951_v20  ;;  %v962_v44 = vunpack.c.l.bf16 %v934_v22  ;;  %v950_v25 = vpack.c.bf16 %v948_v5, %v948_v5 }
 0x1ca   :  { %v548_v10 = vmul.f32 %v546_v17, %v1511_v63  ;;  %v963_v24 = vunpack.c.l.bf16 %v939_v28  ;;  %v952_v30 = vadd.f32 %v1540_v57, %v1551_v40  ;;  %v797_v63 = vrot.slane %v1412_v39, 1 }
 0x1cb   :  { %v964_v32 = vunpack.c.l.bf16 %v940_v13  ;;  %v955_v8 = vunpack.c.l.bf16 %v953_v18  ;;  %v589_v31 = vpack.c.bf16 %v587_v34, %v587_v34  ;;  %v586_v15 = vunpack.c.l.bf16 %v582_v0 }
 0x1cc   :  { %v550_v19 = vpack.c.bf16 %v548_v10, %v548_v10  ;;  %v949_v37 = vpack.c.bf16 %v947_v2, %v947_v2  ;;  %v954_v42 = vpack.c.bf16 %v952_v30, %v952_v30  ;;  %v799_v43 = vmul.f32 %v797_v63, %v1412_v39  ;;  %v617_v59 = vpop.permute.xlu2 %616 }
 0x1cd   :  { %v957_v41 = vsub.f32 %v955_v8, %v935_v56  ;;  %v965_v45 = vmul.f32 %v963_v24, %v961_v12  ;;  %v592_v46 = vunpack.c.l.bf16 %v275_v11  ;;  %v977_v49 = vperm.slane %v972_v50, %v1294_v35 }
 0x1ce   :  { %v584_v36 = vunpack.c.l.bf16 %v550_v19  ;;  %v966_v26 = vmul.f32 %v964_v32, %v962_v44  ;;  %v1025_v51 = vunpack.c.l.bf16 %v950_v25  ;;  %v956_v3 = vunpack.c.l.bf16 %v954_v42 }
 0x1cf   :  { %v959_v52 = vpack.c.bf16 %v957_v41, %v957_v41  ;;  %v800_v23 = vpack.c.bf16 %v799_v43, %v799_v43  ;;  %v593_v1 = vunpack.c.l.bf16 %v589_v31  ;;  %v1560_v53 = vsub.f32 %v1534_v27, %v1518_v29  ;;  %v608_v27 = vpop.permute.xlu0 %607 }
 0x1d0   :  { %v588_v38 = vsub.f32 %v584_v36, %v586_v15  ;;  %v1024_v54 = vunpack.c.l.bf16 %v949_v37  ;;  %v986_v33 = vperm.slane %v981_v6, %v1294_v35  ;;  %v958_v39 = vsub.f32 %v956_v3, %v936_v62 }
 0x1d1   :  { %v1026_v61 = vunpack.c.l.bf16 %v959_v52  ;;  %v988_v56 = vpack.i.b16 %v800_v23, %v800_v23  ;;  %v967_v21 = vpack.c.bf16 %v965_v45, %v965_v45  ;;  %v991_v47 = vunpack.c.l.bf16 %v977_v49 }
 0x1d2   :  { %v638_v60 = vpop.permute.xlu1 %637  ;;  %v590_v16 = vpack.c.bf16 %v588_v38, %v588_v38  ;;  %v968_v17 = vpack.c.bf16 %v966_v26, %v966_v26  ;;  %v992_v22 = vunpack.c.l.bf16 %v986_v33  ;;  %v960_v58 = vpack.c.bf16 %v958_v39, %v958_v39 }
 0x1d3   :  { %v1028_v5 = vmul.f32 %v1026_v61, %v1024_v54  ;;  %v990_v34 = vperm.slane %v988_v56, 1  ;;  %v655_v0 = vperm.slane %v1514_v48, 0  ;;  %v626_v4 = vperm.slane %v1493_v9, 0 }
 0x1d4   :  { %v622_v20 = vperm.slane %v617_v59, %v1294_v35  ;;  %v643_v62 = vperm.slane %v638_v60, %v1294_v35  ;;  %v1568_v50 = vsub.f32 %v1484_v14, %v593_v1  ;;  %v1027_v10 = vunpack.c.l.bf16 %v960_v58 }
 0x1d5   :  { %v1030_v6 = vpack.c.bf16 %v1028_v5, %v1028_v5  ;;  %v993_v28 = vunpack.c.l.bf16 %v990_v34  ;;  %v658_v2 = vunpack.c.l.bf16 %v655_v0  ;;  %v594_v11 = vunpack.c.l.bf16 %v590_v16  ;;  %v646_v49 = vpop.permute.xlu2 %645 }
 0x1d6   :  { %v1570_v12 = vunpack.c.l.bf16 %v967_v21  ;;  %v656_v13 = vunpack.c.l.bf16 %v643_v62  ;;  %v613_v48 = vperm.slane %v608_v27, %v1294_v35  ;;  %v1029_v19 = vmul.f32 %v1027_v10, %v1025_v51 }
 0x1d7   :  { %v1032_v18 = vunpack.c.l.bf16 %v1030_v6  ;;  %v994_v9 = vadd.f32 %v993_v28, %v991_v47  ;;  %v995_v44 = vadd.f32 %v993_v28, %v992_v22  ;;  %v629_v25 = vunpack.c.l.bf16 %v626_v4 }
 0x1d8   :  { %v628_v24 = vunpack.c.l.bf16 %v622_v20  ;;  %v659_v32 = vsub.f32 %v656_v13, %v658_v2  ;;  %v627_v8 = vunpack.c.l.bf16 %v613_v48  ;;  %v1031_v30 = vpack.c.bf16 %v1029_v19, %v1029_v19 }
 0x1d9   :  { %v1038_v14 = vadd.f32 1.0011718e-07, %v1032_v18  ;;  %v996_v63 = vpack.c.bf16 %v994_v9, %v994_v9  ;;  %v997_v31 = vpack.c.bf16 %v995_v44, %v995_v44  ;;  %v1573_v36 = vunpack.c.l.bf16 %v968_v17 }
 0x1da   :  { %v661_v15 = vpack.c.bf16 %v659_v32, %v659_v32  ;;  %v630_v37 = vsub.f32 %v627_v8, %v629_v25  ;;  %v1575_v41 = vsub.f32 %v592_v46, %v594_v11  ;;  %v1033_v43 = vunpack.c.l.bf16 %v1031_v30 }
 0x1db   :  { %v1040_v42 = vpack.c.bf16 %v1038_v14, %v1038_v14  ;;  %v998_v45 = vunpack.c.l.bf16 %v996_v63  ;;  %v999_v38 = vunpack.c.l.bf16 %v997_v31  ;;  %v631_v26 = vsub.f32 %v628_v24, %v629_v25 }
 0x1dc   :  { %v663_v51 = vand.u32 2147450879, %v661_v15  ;;  %v632_v52 = vpack.c.bf16 %v630_v37, %v630_v37  ;;  %v1039_v23 = vadd.f32 1.0011718e-07, %v1033_v43  ;;  %v695_v33 = vpack.c.bf16 %v1560_v53, %v1560_v53 }
 0x1dd   :  { %v1042_v3 = vunpack.c.l.bf16 %v1040_v42  ;;  %v1002_v1 = vsub.f32 %v998_v45, %v1570_v12  ;;  %v1003_v54 = vsub.f32 %v999_v38, %v1573_v36  ;;  %v651_v39 = vperm.slane %v646_v49, %v1294_v35 }
 0x1de   :  { %v667_v61 = vunpack.c.l.bf16 %v663_v51  ;;  %v634_v46 = vand.u32 2147450879, %v632_v52  ;;  %v1041_v56 = vpack.c.bf16 %v1039_v23, %v1039_v23  ;;  %v727_v60 = vsub.f32 %v1542_v55, %v1540_v57 }
 0x1df   :  { %1189 = vrcp.f32 %v1042_v3  ;;  %v1004_v21 = vpack.c.bf16 %v1002_v1, %v1002_v1  ;;  %v1005_v59 = vpack.c.bf16 %v1003_v54, %v1003_v54  ;;  %v657_v47 = vunpack.c.l.bf16 %v651_v39 }
 0x1e0   :  { %v665_v16 = vunpack.c.l.bf16 %v634_v46  ;;  %v1043_v17 = vunpack.c.l.bf16 %v1041_v56  ;;  %v633_v58 = vpack.c.bf16 %v631_v26, %v631_v26  ;;  %v697_v34 = vand.u32 2147450879, %v695_v33 }
 0x1e1   :  { %v1006_v22 = vunpack.c.l.bf16 %v1004_v21  ;;  %v1007_v5 = vunpack.c.l.bf16 %v1005_v59  ;;  %v660_v53 = vsub.f32 %v657_v47, %v658_v2  ;;  %v694_v27 = vsub.f32 %v1523_v7, %v1518_v29 }
 0x1e2   :  { %v669_v0 = vadd.f32 %v667_v61, %v665_v16  ;;  %1191 = vrcp.f32 %v1043_v17  ;;  %v729_v20 = vpack.c.bf16 %v727_v60, %v727_v60  ;;  %v635_v11 = vand.u32 2147450879, %v633_v58 }
 0x1e3   :  { %v1008_v35 = vadd.f32 1.0011718e-07, %v1006_v22  ;;  %v1009_v4 = vadd.f32 1.0011718e-07, %v1007_v5  ;;  %v662_v6 = vpack.c.bf16 %v660_v53, %v660_v53  ;;  %v701_v13 = vunpack.c.l.bf16 %v697_v34 }
 0x1e4   :  { %v671_v62 = vpack.c.bf16 %v669_v0, %v669_v0  ;;  %v1034_v48 = vsub.f32 %v1032_v18, %v1006_v22  ;;  %v696_v44 = vpack.c.bf16 %v694_v27, %v694_v27  ;;  %v1035_v24 = vsub.f32 %v1033_v43, %v1007_v5 }
 0x1e5   :  { %v1190_v10 = vpop.eup %1189  ;;  %v1010_v55 = vpack.c.bf16 %v1008_v35, %v1008_v35  ;;  %v1011_v28 = vpack.c.bf16 %v1009_v4, %v1009_v4  ;;  %v664_v9 = vand.u32 2147450879, %v662_v6  ;;  %v731_v32 = vand.u32 2147450879, %v729_v20 }
 0x1e6   :  { %v699_v19 = vunpack.c.l.bf16 %v671_v62  ;;  %v1046_v29 = vpack.c.bf16 %v1190_v10, %v1190_v10  ;;  %v728_v30 = vsub.f32 %v1551_v40, %v1540_v57  ;;  %v666_v63 = vunpack.c.l.bf16 %v635_v11 }
 0x1e7   :  { %v1012_v25 = vunpack.c.l.bf16 %v1010_v55  ;;  %v1013_v2 = vunpack.c.l.bf16 %v1011_v28  ;;  %v668_v8 = vunpack.c.l.bf16 %v664_v9  ;;  %v1036_v31 = vpack.c.bf16 %v1034_v48, %v1034_v48 }
 0x1e8   :  { %v703_v7 = vadd.f32 %v701_v13, %v699_v19  ;;  %v1192_v14 = vpop.eup %1191  ;;  %v698_v37 = vand.u32 2147450879, %v696_v44  ;;  %v1037_v42 = vpack.c.bf16 %v1035_v24, %v1035_v24  ;;  %v735_v38 = vunpack.c.l.bf16 %v731_v32 }
 0x1e9   :  { %1193 = vrcp.f32 %v1012_v25  ;;  %v1047_v15 = vpack.c.bf16 %v1192_v14, %v1192_v14  ;;  %v670_v45 = vadd.f32 %v668_v8, %v666_v63  ;;  %v1050_v49 = vunpack.c.l.bf16 %v1046_v29 }
 0x1ea   :  { %1195 = vrcp.f32 %v1013_v2  ;;  %v705_v18 = vpack.c.bf16 %v703_v7, %v703_v7  ;;  %v730_v26 = vpack.c.bf16 %v728_v30, %v728_v30  ;;  %v1048_v3 = vunpack.c.l.bf16 %v1036_v31 }
 0x1eb   :  { %v1051_v51 = vunpack.c.l.bf16 %v1047_v15  ;;  %v672_v52 = vpack.c.bf16 %v670_v45, %v670_v45  ;;  %v597_v23 = vpack.c.bf16 %v1568_v50, %v1568_v50  ;;  %v702_v1 = vunpack.c.l.bf16 %v698_v37 }
 0x1ec   :  { %v733_v43 = vunpack.c.l.bf16 %v705_v18  ;;  %v1049_v54 = vunpack.c.l.bf16 %v1037_v42  ;;  %v1052_v39 = vmul.f32 %v1050_v49, %v1048_v3  ;;  %v732_v21 = vand.u32 2147450879, %v730_v26 }
 0x1ed   :  { %v700_v33 = vunpack.c.l.bf16 %v672_v52  ;;  %v741_v17 = vunpack.c.l.bf16 %v597_v23  ;;  %v598_v6 = vpack.c.bf16 %v1575_v41, %v1575_v41 }
 0x1ee   :  { %v737_v57 = vadd.f32 %v735_v38, %v733_v43  ;;  %v1053_v60 = vmul.f32 %v1051_v51, %v1049_v54  ;;  %v1054_v34 = vpack.c.bf16 %v1052_v39, %v1052_v39  ;;  %v736_v53 = vunpack.c.l.bf16 %v732_v21 }
 0x1ef   :  { %v1194_v40 = vpop.eup %1193  ;;  %v704_v16 = vadd.f32 %v702_v1, %v700_v33  ;;  %v742_v44 = vunpack.c.l.bf16 %v598_v6 }
 0x1f0   :  { %v1196_v61 = vpop.eup %1195  ;;  %v1016_v46 = vpack.c.bf16 %v1194_v40, %v1194_v40  ;;  %v739_v56 = vpack.c.bf16 %v737_v57, %v737_v57  ;;  %v1055_v35 = vpack.c.bf16 %v1053_v60, %v1053_v60  ;;  %v1058_v28 = vunpack.c.l.bf16 %v1054_v34 }
 0x1f1   :  { %v1017_v59 = vpack.c.bf16 %v1196_v61, %v1196_v61  ;;  %v706_v58 = vpack.c.bf16 %v704_v16, %v704_v16 }
 0x1f2   :  { %v1018_v47 = vunpack.c.l.bf16 %v1016_v46  ;;  %v743_v22 = vunpack.c.l.bf16 %v739_v56  ;;  %v1059_v48 = vunpack.c.l.bf16 %v1055_v35 }
 0x1f3   :  { %v1019_v5 = vunpack.c.l.bf16 %v1017_v59  ;;  %v734_v4 = vunpack.c.l.bf16 %v706_v58 }
 0x1f4   :  { %v1020_v50 = vmul.f32 %v1018_v47, %v1570_v12  ;;  %v745_v0 = vadd.f32 %v743_v22, %v741_v17 }
 0x1f5   :  { %v1021_v27 = vmul.f32 %v1019_v5, %v1573_v36  ;;  %v738_v10 = vadd.f32 %v736_v53, %v734_v4 }
 0x1f6   :  { %v1022_v20 = vpack.c.bf16 %v1020_v50, %v1020_v50  ;;  %v747_v11 = vpack.c.bf16 %v745_v0, %v745_v0 }
 0x1f7   :  { %v1023_v62 = vpack.c.bf16 %v1021_v27, %v1021_v27  ;;  %v740_v19 = vpack.c.bf16 %v738_v10, %v738_v10 }
 0x1f8   :  { %v1056_v55 = vunpack.c.l.bf16 %v1022_v20  ;;  %v1064_v36 = vunpack.c.l.bf16 %v747_v11 }
 0x1f9   :  { %v1057_v13 = vunpack.c.l.bf16 %v1023_v62  ;;  %v744_v25 = vunpack.c.l.bf16 %v740_v19 }
 0x1fa   :  { %v1060_v12 = vsub.f32 %v1056_v55, %v1058_v28 }
 0x1fb   :  { %v1061_v9 = vsub.f32 %v1057_v13, %v1059_v48  ;;  %v746_v32 = vadd.f32 %v744_v25, %v742_v44 }
 0x1fc   :  { %v1062_v2 = vpack.c.bf16 %v1060_v12, %v1060_v12 }
 0x1fd   :  { %v1063_v24 = vpack.c.bf16 %v1061_v9, %v1061_v9  ;;  %v748_v7 = vpack.c.bf16 %v746_v32, %v746_v32 }
 0x1fe   :  { %v1066_v29 = vunpack.c.l.bf16 %v1062_v2 }
 0x1ff   :  { %v1067_v14 = vunpack.c.l.bf16 %v1063_v24  ;;  %v1065_v41 = vunpack.c.l.bf16 %v748_v7 }
 0x200   :  { %v1068_v8 = vsub.f32 %v1064_v36, %v1066_v29 }
 0x201   :  { %v1069_v63 = vsub.f32 %v1065_v41, %v1067_v14 }
 0x202   :  { %v1070_v30 = vpack.c.bf16 %v1068_v8, %v1068_v8 }
 0x203   :  { %v1071_v15 = vpack.c.bf16 %v1069_v63, %v1069_v63 }
 0x204   :  { %v1072_v31 = vunpack.c.l.bf16 %v1070_v30 }
 0x205   :  { %v1073_v18 = vunpack.c.l.bf16 %v1071_v15 }
 0x206   :  { %1074 = vst [vmem:[%s1606_s6] sm:$0xff] %v1072_v31 }
 0x207   :  { %1075 = vst [vmem:[%s1606_s6 + $0x8] sm:$0xff] %v1073_v18 }

</bundles_post_ra>
